<compile_context>
chip_gen: v7x
topology: tpu7x:2x2x1
jax: 0.10.0
libtpu: 0.0.40
codegen_flags: <defaults>
</compile_context>

<pallas_src>
import numpy as np
import jax
import jax.numpy as jnp
from jax.experimental import pallas as pl
from jax.experimental.pallas import tpu as pltpu


# ----------------------------------------------------------------------------
# Deterministic parameter construction (replicates librosa.filters.mel with
# default slaney mel scale + slaney norm, and torch.hann_window periodic=True).
# ----------------------------------------------------------------------------
def _hz_to_mel(f):
    f = np.asarray(f, dtype=np.float64)
    f_sp = 200.0 / 3.0
    mels = f / f_sp
    min_log_hz = 1000.0
    min_log_mel = min_log_hz / f_sp
    logstep = np.log(6.4) / 27.0
    return np.where(f >= min_log_hz,
                    min_log_mel + np.log(np.maximum(f, 1e-10) / min_log_hz) / logstep,
                    mels)


def _mel_to_hz(m):
    m = np.asarray(m, dtype=np.float64)
    f_sp = 200.0 / 3.0
    freqs = f_sp * m
    min_log_hz = 1000.0
    min_log_mel = min_log_hz / f_sp
    logstep = np.log(6.4) / 27.0
    return np.where(m >= min_log_mel,
                    min_log_hz * np.exp(logstep * (m - min_log_mel)),
                    freqs)


def mel_filterbank(sr, n_fft, n_mels, fmin=0.0, fmax=None):
    """librosa.filters.mel(sr, n_fft, n_mels) with default args (slaney/slaney)."""
    if fmax is None:
        fmax = sr / 2.0
    n_freqs = 1 + n_fft // 2
    fftfreqs = np.linspace(0.0, sr / 2.0, n_freqs)
    mel_pts = _mel_to_hz(np.linspace(_hz_to_mel(fmin), _hz_to_mel(fmax), n_mels + 2))
    fdiff = np.diff(mel_pts)
    ramps = mel_pts[:, None] - fftfreqs[None, :]
    lower = -ramps[:-2] / fdiff[:-1, None]
    upper = ramps[2:] / fdiff[1:, None]
    weights = np.maximum(0.0, np.minimum(lower, upper))
    enorm = 2.0 / (mel_pts[2:n_mels + 2] - mel_pts[:n_mels])
    weights *= enorm[:, None]
    return weights.astype(np.float32)  # [n_mels, n_freqs]


def hann_window(win_length):
    # torch.hann_window(win_length) default periodic=True
    n = np.arange(win_length, dtype=np.float64)
    return (0.5 - 0.5 * np.cos(2.0 * np.pi * n / win_length)).astype(np.float32)


def windowed_trig_matrix(n_fft, window, f_keep):
    """Hann-windowed [cos | -sin] DFT projection matrix, shape [n_fft, 2*f_keep].

    X[k] = sum_n x[n] * w[n] * e^{-i 2*pi*k*n/N}; the window is folded in here
    so the kernel never multiplies by it.  Only bins 0..f_keep-1 are kept
    (the Nyquist bin has exactly zero mel weight for fmin=0, fmax=sr/2).
    """
    n = np.arange(n_fft, dtype=np.float64)
    k = np.arange(f_keep, dtype=np.float64)
    ang = 2.0 * np.pi * np.outer(n, k) / n_fft            # [n_fft, f_keep]
    cos_m = np.cos(ang)
    sin_m = -np.sin(ang)
    trig = np.concatenate([cos_m, sin_m], axis=1)         # [n_fft, 2*f_keep]
    trig = window.astype(np.float64)[:, None] * trig
    return trig.astype(np.float32)


# ----------------------------------------------------------------------------
# Pallas kernel: per tile of frame rows do
#   (windowed) DFT matmul (fused cos|sin) -> magnitude -> mel projection.
# ----------------------------------------------------------------------------
def _mel_kernel(frames_ref, trig_ref, melT_ref, out_ref):
    f_keep = trig_ref.shape[1] // 2
    # frames and trig are bf16; accumulate in f32 on the MXU.
    reim = jnp.dot(frames_ref[...], trig_ref[...],
                   preferred_element_type=jnp.float32)     # (tn, 2*F)  f32
    re = reim[:, :f_keep]                                  # tile-aligned static slices
    im = reim[:, f_keep:]
    mag = jnp.sqrt(re * re + im * im)                      # (tn, F)  f32 elementwise
    # Mel projection: bf16 operands, f32 accumulation -> single-pass MXU.
    out_ref[...] = jnp.dot(mag.astype(jnp.bfloat16), melT_ref[...],
                           preferred_element_type=jnp.float32)  # (tn, 128)


def mel_spectrogram_pallas(x, *, win_length=1024, hop_length=256, n_fft=1024,
                           n_mels=24, sr=16000, tile_n=512):
    """x: [B, L] float32 waveform -> [B, n_mels, T] float32 mel spectrogram."""
    assert win_length == n_fft, "this kernel assumes win_length == n_fft"
    B, L = x.shape
    f_keep = n_fft // 2          # drop the Nyquist bin (zero mel weight) -> 512
    n_mels_pad = 128             # lane-dense output

    # --- parameters (deterministic) ---
    window = hann_window(win_length)
    trig_np = windowed_trig_matrix(n_fft, window, f_keep)           # [n_fft, 2*F]
    trig = jnp.asarray(trig_np, dtype=jnp.bfloat16)
    mel_np = mel_filterbank(sr, n_fft, n_mels)                      # [n_mels, n_freqs]
    # Dropping the Nyquist column is exact only if its weights are all zero.
    assert np.allclose(mel_np[:, -1], 0.0), "Nyquist mel weights must be zero"
    melT_np = np.zeros((f_keep, n_mels_pad), dtype=np.float32)
    melT_np[:, :n_mels] = mel_np[:, :f_keep].T
    melT = jnp.asarray(melT_np, dtype=jnp.bfloat16)                 # [F, 128] bf16

    # --- framing glue (matches torch.stft center=True, pad_mode='reflect') ---
    pad = n_fft // 2
    xp = jnp.pad(x, ((0, 0), (pad, pad)), mode="reflect")           # [B, L + n_fft]
    T = 1 + L // hop_length
    if (L + n_fft) % hop_length == 0 and n_fft % hop_length == 0:
        # Gather-free framing: hop-sized chunks, 4 static slices + concat.
        n_chunks = (L + n_fft) // hop_length
        chunks = xp.reshape(B, n_chunks, hop_length)
        n_per_frame = n_fft // hop_length
        frames = jnp.concatenate(
            [chunks[:, j:j + T, :] for j in range(n_per_frame)], axis=2)  # [B, T, n_fft]
    else:
        idx = (jnp.arange(T)[:, None] * hop_length + jnp.arange(n_fft)[None, :])
        frames = xp[:, idx]                                          # [B, T, n_fft]
    rows = B * T

    # Row tile: as large as tile_n, but (a) clamp for tiny inputs and (b) keep
    # at least 2 grid steps for moderate inputs so both v7x TensorCores work.
    rows8 = ((rows + 7) // 8) * 8
    if rows8 <= 256:
        tile_n_eff = rows8
    else:
        two_step = ((rows8 + 1) // 2 + 7) // 8 * 8   # ceil(rows8/2), 8-aligned
        tile_n_eff = min(tile_n, two_step)
    rows_pad = pl.cdiv(rows, tile_n_eff) * tile_n_eff

    frames = frames.reshape(rows, n_fft)
    frames = jnp.pad(frames, ((0, rows_pad - rows), (0, 0)))
    frames = frames.astype(jnp.bfloat16)                             # bf16 MXU operands

    grid = (rows_pad // tile_n_eff,)
    out = pl.pallas_call(
        _mel_kernel,
        out_shape=jax.ShapeDtypeStruct((rows_pad, n_mels_pad), jnp.float32),
        grid_spec=pltpu.PrefetchScalarGridSpec(
            num_scalar_prefetch=0,
            grid=grid,
            in_specs=[
                pl.BlockSpec((tile_n_eff, n_fft), lambda i: (i, 0)),
                pl.BlockSpec((n_fft, 2 * f_keep), lambda i: (0, 0)),
                pl.BlockSpec((f_keep, n_mels_pad), lambda i: (0, 0)),
            ],
            out_specs=pl.BlockSpec((tile_n_eff, n_mels_pad), lambda i: (i, 0)),
        ),
        compiler_params=pltpu.CompilerParams(
            dimension_semantics=("parallel",),
            vmem_limit_bytes=32 << 20),
    )(frames, trig, melT)

    mel = out[:rows, :n_mels].reshape(B, T, n_mels)                  # [B, T, n_mels]
    return jnp.transpose(mel, (0, 2, 1))                             # [B, n_mels, T]


# ----------------------------------------------------------------------------
# Pure-JAX reference (full f32, all 513 bins) for a sanity check.
# ----------------------------------------------------------------------------
def mel_spectrogram_ref(x, *, win_length=1024, hop_length=256, n_fft=1024,
                        n_mels=24, sr=16000):
    B, L = x.shape
    n_freqs = 1 + n_fft // 2
    window = jnp.asarray(hann_window(win_length))
    pad = n_fft // 2
    xp = jnp.pad(x, ((0, 0), (pad, pad)), mode="reflect")
    T = 1 + L // hop_length
    idx = (jnp.arange(T)[:, None] * hop_length + jnp.arange(n_fft)[None, :])
    frames = xp[:, idx] * window[None, None, :]                      # [B, T, n_fft]
    n = np.arange(n_fft, dtype=np.float64)
    k = np.arange(n_freqs, dtype=np.float64)
    ang = 2.0 * np.pi * np.outer(n, k) / n_fft
    cos_m = jnp.asarray(np.cos(ang).astype(np.float32))
    sin_m = jnp.asarray((-np.sin(ang)).astype(np.float32))
    re = jnp.einsum("btn,nf->btf", frames, cos_m)
    im = jnp.einsum("btn,nf->btf", frames, sin_m)
    spec = jnp.sqrt(re * re + im * im)                               # [B, T, F]
    mel_b = jnp.asarray(mel_filterbank(sr, n_fft, n_mels))           # [n_mels, F]
    mel = jnp.einsum("mf,btf->bmt", mel_b, spec)                     # [B, n_mels, T]
    return mel


if __name__ == "__main__":
    # Small but consistent shapes: B=2 waveforms of 2048 samples
    # -> T = 1 + 2048 // 256 = 9 frames, output [2, 24, 9].
    key = jax.random.PRNGKey(0)
    B, L = 2, 2048
    x = jax.random.normal(key, (B, L), dtype=jnp.float32)

    out = mel_spectrogram_pallas(x)
    out = jax.block_until_ready(out)

    ref = jax.block_until_ready(mel_spectrogram_ref(x))

    assert out.shape == (B, 24, 1 + L // 256), out.shape
    assert bool(jnp.all(jnp.isfinite(out)))
    rel_err = float(jnp.max(jnp.abs(out - ref)) / (jnp.max(jnp.abs(ref)) + 1e-6))
    assert rel_err < 5e-2, f"relative error too large: {rel_err}"

    print("KERNEL_OK")
</pallas_src>

<mosaic_0001>
module attributes {stable_mosaic.version = 11 : i64} {
  func.func @_mel_kernel(%arg0: i32, %arg1: memref<24x1024xbf16, #tpu.memory_space<vmem>>, %arg2: memref<1024x1024xbf16, #tpu.memory_space<vmem>>, %arg3: memref<512x128xbf16, #tpu.memory_space<vmem>>, %arg4: memref<24x128xf32, #tpu.memory_space<vmem>>) attributes {dimension_semantics = [#tpu.dimension_semantics<parallel>], iteration_bounds = array<i64: 1>, scalar_prefetch = 0 : i64, scratch_operands = 0 : i64, tpu.core_type = #tpu.core_type<tc>, window_params = [{transform_indices = @transform_0, window_bounds = array<i64: 24, 1024>}, {pipeline_mode = #tpu.pipeline_mode<synchronous>, transform_indices = @transform_1, window_bounds = array<i64: 1024, 1024>}, {pipeline_mode = #tpu.pipeline_mode<synchronous>, transform_indices = @transform_2, window_bounds = array<i64: 512, 128>}, {transform_indices = @transform_3, window_bounds = array<i64: 24, 128>}]} {
    %c0 = arith.constant 0 : index
    %c0_0 = arith.constant 0 : index
    %0 = vector.load %arg1[%c0, %c0_0] : memref<24x1024xbf16, #tpu.memory_space<vmem>>, vector<24x1024xbf16>
    %c0_1 = arith.constant 0 : index
    %c0_2 = arith.constant 0 : index
    %1 = vector.load %arg2[%c0_1, %c0_2] : memref<1024x1024xbf16, #tpu.memory_space<vmem>>, vector<1024x1024xbf16>
    %cst = arith.constant dense<0.000000e+00> : vector<24x1024xf32>
    %2 = tpu.matmul %0, %1, %cst {dimension_numbers = #tpu.dot_dimension_numbers<[1], [0], [0], [1], [0, 0, 1, 1], [], []>} : vector<24x1024xbf16>, vector<1024x1024xbf16>, vector<24x1024xf32> -> vector<24x1024xf32>
    %3 = vector.extract_strided_slice %2 {offsets = [0, 0], sizes = [24, 512], strides = [1, 1]} : vector<24x1024xf32> to vector<24x512xf32>
    %4 = vector.extract_strided_slice %2 {offsets = [0, 512], sizes = [24, 512], strides = [1, 1]} : vector<24x1024xf32> to vector<24x512xf32>
    %5 = arith.mulf %3, %3 : vector<24x512xf32>
    %6 = arith.mulf %4, %4 : vector<24x512xf32>
    %7 = arith.addf %5, %6 : vector<24x512xf32>
    %8 = math.sqrt %7 : vector<24x512xf32>
    %9 = arith.truncf %8 : vector<24x512xf32> to vector<24x512xbf16>
    %c0_3 = arith.constant 0 : index
    %c0_4 = arith.constant 0 : index
    %10 = vector.load %arg3[%c0_3, %c0_4] : memref<512x128xbf16, #tpu.memory_space<vmem>>, vector<512x128xbf16>
    %cst_5 = arith.constant dense<0.000000e+00> : vector<24x128xf32>
    %11 = tpu.matmul %9, %10, %cst_5 {dimension_numbers = #tpu.dot_dimension_numbers<[1], [0], [0], [1], [0, 0, 1, 1], [], []>} : vector<24x512xbf16>, vector<512x128xbf16>, vector<24x128xf32> -> vector<24x128xf32>
    %c0_6 = arith.constant 0 : index
    %c0_7 = arith.constant 0 : index
    %12 = vector.load %arg4[%c0_6, %c0_7] : memref<24x128xf32, #tpu.memory_space<vmem>>, vector<24x128xf32>
    tpu.vector_store %arg4[%c0_6, %c0_7], %11 {strides = array<i32>} : memref<24x128xf32, #tpu.memory_space<vmem>>, vector<24x128xf32>,
    return
  }
  func.func @transform_0(%arg0: i32) -> (i32, i32) {
    %c0_i32 = arith.constant 0 : i32
    %c0_i32_0 = arith.constant 0 : i32
    return %arg0, %c0_i32 : i32, i32
  }
  func.func @transform_1(%arg0: i32) -> (i32, i32) {
    %c0_i32 = arith.constant 0 : i32
    %c0_i32_0 = arith.constant 0 : i32
    %c0_i32_1 = arith.constant 0 : i32
    return %c0_i32, %c0_i32_0 : i32, i32
  }
  func.func @transform_2(%arg0: i32) -> (i32, i32) {
    %c0_i32 = arith.constant 0 : i32
    %c0_i32_0 = arith.constant 0 : i32
    %c0_i32_1 = arith.constant 0 : i32
    return %c0_i32, %c0_i32_0 : i32, i32
  }
  func.func @transform_3(%arg0: i32) -> (i32, i32) {
    %c0_i32 = arith.constant 0 : i32
    %c0_i32_0 = arith.constant 0 : i32
    return %arg0, %c0_i32 : i32, i32
  }
}

</mosaic_0001>

<bundles_post_ra>
// kernel: tpu_custom_call.1
= control target key start
LH: loop header
LB: loop body
LE: loop exit
PB: predicated region body
PF: predicated region fallthrough
CT: control target
= control target key end

     0   :  { %8 = vsyncpa [#allocation3], 0  ;;  %s5797_s0 = inlined_call_operand.hbm [shape: bf16[24,1024], index: 0, kind: input, shape index: {}]   ;;  %s5798_s1 = inlined_call_operand.hbm [shape: bf16[1024,1024], index: 1, kind: input, shape index: {}]   ;;  %s5799_s2 = inlined_call_operand.hbm [shape: bf16[512,128], index: 2, kind: input, shape index: {}]   ;;  %s5800_s3 = inlined_call_operand.hbm [shape: f32[24,128], index: 3, kind: output, shape index: {}]  }
   0x1   :  { %9 = vsyncpa [#allocation6], 0 }
   0x2   :  { %10 = vsyncpa [#allocation4], 0  ;;  %s5406_s12 = smov [#allocation5]   ;;  %s5407_s14 = smov [#allocation2]  }
   0x3   :  { %s28_s13 = sshll.u32 %s5406_s12, 4  ;;  %s16_s15 = sshll.u32 %s5407_s14, 4  ;;  %s29_s13 = int_to_ptr.vmem [resolvable:$true] %s28_s13  ;;  %s5436_s15 = int_to_ptr.vmem [resolvable:$true] %s16_s15 }
   0x4   :  { %s5312_s18 = scalar_lea.hbm %s5798_s1, 65536 }
   0x5   :  { %p5313_p0 = scmp.ne.s32.totalorder %s5798_s1, %s5312_s18  ;;  %p5316_p1 = scmp.lt.u32.totalorder %s5312_s18, %s5798_s1 }
   0x7   :  { %p5318_p2 = pnand %p5316_p1, %p5313_p0 }
   0x9   :  { %5321 = shalt.err (!%p5318_p2)
}
   0xa   :  { %s5322_s23 = scalar_lea.vmem %s29_s13, 65536  ;;  %p5327_p4 = scmp.lt.s32.totalorder %s29_s13, %s29_s13 }
   0xb   :  { %p5323_p3 = scmp.ne.s32.totalorder %s29_s13, %s5322_s23  ;;  %p5328_p5 = scmp.lt.s32.totalorder %s5322_s23, %s5322_s23 }
   0xd   :  { %p5329_p6 = por %p5328_p5, %p5327_p4 }
   0xf   :  { %p5330_p7 = pnand %p5329_p6, %p5323_p3 }
  0x11   :  { %5333 = shalt.err (!%p5330_p7)
}
  0x12   :  { %s5408_s24 = smov 512   ;;  %s5409_s25 = smov 32  }
  0x13   :  { %34 = dma.hbm_to_vmem [thread:$0]  %s5798_s1, 65536, %s29_s13, [#allocation6], %s5408_s24, %s5408_s24, %s5409_s25  }
  0x14   :  { %s5334_s30 = scalar_lea.hbm %s5797_s0, 1536 }
  0x15   :  { %p5335_p8 = scmp.ne.s32.totalorder %s5797_s0, %s5334_s30  ;;  %p5338_p9 = scmp.lt.u32.totalorder %s5334_s30, %s5797_s0 }
  0x17   :  { %p5340_p10 = pnand %p5338_p9, %p5335_p8 }
  0x19   :  { %5343 = shalt.err (!%p5340_p10)
}
  0x1a   :  { %s5344_s8 = scalar_lea.vmem %s5436_s15, 1536  ;;  %p5349_p12 = scmp.lt.s32.totalorder %s5436_s15, %s5436_s15 }
  0x1b   :  { %p5345_p11 = scmp.ne.s32.totalorder %s5436_s15, %s5344_s8  ;;  %p5350_p13 = scmp.lt.s32.totalorder %s5344_s8, %s5344_s8 }
  0x1d   :  { %p5351_p0 = por %p5350_p13, %p5349_p12 }
  0x1f   :  { %p5352_p1 = pnand %p5351_p0, %p5345_p11 }
  0x21   :  { %5355 = shalt.err (!%p5352_p1)
}
  0x22   :  { %22 = dma.hbm_to_vmem [thread:$0]  %s5797_s0, 1536, %s5436_s15, [#allocation3], %s5408_s24, %s5408_s24, %s5409_s25  }
  0x23   :  { %s5410_s10 = smov [#allocation7]   ;;  %s5356_s14 = scalar_lea.hbm %s5799_s2, 4096 }
  0x24   :  { %s40_s11 = sshll.u32 %s5410_s10, 4  ;;  %p5357_p2 = scmp.ne.s32.totalorder %s5799_s2, %s5356_s14  ;;  %s41_s11 = int_to_ptr.vmem [resolvable:$true] %s40_s11 }
  0x25   :  { %p5360_p3 = scmp.lt.u32.totalorder %s5356_s14, %s5799_s2 }
  0x27   :  { %p5362_p4 = pnand %p5360_p3, %p5357_p2 }
  0x29   :  { %5365 = shalt.err (!%p5362_p4)
}
  0x2a   :  { %s5366_s20 = scalar_lea.vmem %s41_s11, 4096  ;;  %p5371_p6 = scmp.lt.s32.totalorder %s41_s11, %s41_s11 }
  0x2b   :  { %p5367_p5 = scmp.ne.s32.totalorder %s41_s11, %s5366_s20  ;;  %p5372_p7 = scmp.lt.s32.totalorder %s5366_s20, %s5366_s20 }
  0x2d   :  { %p5373_p8 = por %p5372_p7, %p5371_p6 }
  0x2f   :  { %p5374_p9 = pnand %p5373_p8, %p5367_p5 }
  0x31   :  { %5377 = shalt.err (!%p5374_p9)
}
  0x32   :  { %s5411_s0 = smov 64   ;;  %s5412_s15 = smov 4  }
  0x33   :  { %46 = dma.hbm_to_vmem [thread:$0]  %s5799_s2, 4096, %s41_s11, [#allocation6], %s5411_s0, %s5411_s0, %s5412_s15  }
  0x34   :  { %5400 = dma.done.wait [#allocation3], 1536  }
  0x35   :  { %5401 = vsyncadd [#allocation3], 4294965760 }
  0x36   :  { %5402 = dma.done.wait [#allocation6], 69632  }
  0x37   :  { %5403 = vsyncadd [#allocation6], 4294897664  ;;  %v69_v0 = vld [vmem:[#allocation5] sm:$0xff]  ;;  %v70_v2 = vld [vmem:[#allocation5 + $0x8] sm:$0xff]  ;;  %s5413_s2 = smov [#allocation8]  }
  0x38   :  { %v73_v1 = vld [vmem:[#allocation5 + $0x20] sm:$0xff]  ;;  %v74_v4 = vld [vmem:[#allocation5 + $0x28] sm:$0xff]  ;;  %s4513_s23 = sshll.u32 %s5413_s2, 4  ;;  %s4514_s23 = int_to_ptr.vmem [resolvable:$true] %s4513_s23 }
  0x39   :  { %v4543_v3 = vcombine.high %v69_v0, %v73_v1  ;;  %v4542_v5 = vcombine.low %v69_v0, %v73_v1  ;;  %v77_v6 = vld [vmem:[#allocation5 + $0x40] sm:$0xff]  ;;  %v4545_v8 = vcombine.high %v70_v2, %v74_v4  ;;  %v4544_v9 = vcombine.low %v70_v2, %v74_v4  ;;  %v78_v11 = vld [vmem:[#allocation5 + $0x48] sm:$0xff]  ;;  %s5378_s24 = scalar_lea.vmem %s4514_s23, 384  ;;  %p5383_p11 = scmp.lt.s32.totalorder %s4514_s23, %s4514_s23 }
  0x3a   :  { %v81_v7 = vld [vmem:[#allocation5 + $0x60] sm:$0xff]  ;;  %v82_v12 = vld [vmem:[#allocation5 + $0x68] sm:$0xff]  ;;  %p5379_p10 = scmp.ne.s32.totalorder %s4514_s23, %s5378_s24  ;;  %p5384_p12 = scmp.lt.s32.totalorder %s5378_s24, %s5378_s24 }
  0x3b   :  { %v4551_v10 = vcombine.high %v77_v6, %v81_v7  ;;  %v85_v13 = vld [vmem:[#allocation5 + $0x80] sm:$0xff]  ;;  %3209 = vmatprep.subr.bf16.mxu0 %v4543_v3  ;;  %v4553_v14 = vcombine.high %v78_v11, %v82_v12  ;;  %v86_v16 = vld [vmem:[#allocation5 + $0x88] sm:$0xff]  ;;  %3413 = vmatprep.subr.bf16.mxu1 %v4545_v8  ;;  %v4550_v18 = vcombine.low %v77_v6, %v81_v7 }
  0x3c   :  { %v89_v15 = vld [vmem:[#allocation5 + $0xa0] sm:$0xff]  ;;  %v90_v17 = vld [vmem:[#allocation5 + $0xa8] sm:$0xff]  ;;  %3210 = vmatpush1.bf16.msra.mxu0 %v4542_v5  ;;  %3414 = vmatpush1.bf16.msra.mxu1 %v4544_v9  ;;  %v4552_v19 = vcombine.low %v78_v11, %v82_v12  ;;  %p5385_p13 = por %p5384_p12, %p5383_p11 }
  0x3d   :  { %3211 = vmatprep.subr.bf16.mxu0 %v4551_v10  ;;  %v4559_v20 = vcombine.high %v85_v13, %v89_v15  ;;  %3415 = vmatprep.subr.bf16.mxu1 %v4553_v14  ;;  %v4561_v21 = vcombine.high %v86_v16, %v90_v17  ;;  %v93_v22 = vld [vmem:[#allocation5 + $0xc0] sm:$0xff]  ;;  %v94_v24 = vld [vmem:[#allocation5 + $0xc8] sm:$0xff]  ;;  %v4558_v26 = vcombine.low %v85_v13, %v89_v15 }
  0x3e   :  { %v97_v23 = vld [vmem:[#allocation5 + $0xe0] sm:$0xff]  ;;  %v98_v25 = vld [vmem:[#allocation5 + $0xe8] sm:$0xff]  ;;  %v4560_v27 = vcombine.low %v86_v16, %v90_v17  ;;  %p5386_p0 = pnand %p5385_p13, %p5379_p10 }
  0x3f   :  { %v4567_v28 = vcombine.high %v93_v22, %v97_v23  ;;  %v4569_v29 = vcombine.high %v94_v24, %v98_v25  ;;  %v101_v30 = vld [vmem:[#allocation5 + $0x100] sm:$0xff]  ;;  %v102_v32 = vld [vmem:[#allocation5 + $0x108] sm:$0xff]  ;;  %v4566_v34 = vcombine.low %v93_v22, %v97_v23  ;;  %v4568_v35 = vcombine.low %v94_v24, %v98_v25 }
  0x40   :  { %3212 = vmatpush1.bf16.msra.mxu0 %v4550_v18  ;;  %3416 = vmatpush1.bf16.msra.mxu1 %v4552_v19  ;;  %v105_v31 = vld [vmem:[#allocation5 + $0x120] sm:$0xff]  ;;  %v106_v33 = vld [vmem:[#allocation5 + $0x128] sm:$0xff] }
  0x41   :  { %3213 = vmatprep.subr.bf16.mxu0 %v4559_v20  ;;  %3417 = vmatprep.subr.bf16.mxu1 %v4561_v21  ;;  %v4575_v36 = vcombine.high %v101_v30, %v105_v31  ;;  %v4577_v37 = vcombine.high %v102_v32, %v106_v33  ;;  %v109_v38 = vld [vmem:[#allocation5 + $0x140] sm:$0xff]  ;;  %v110_v40 = vld [vmem:[#allocation5 + $0x148] sm:$0xff]  ;;  %v4574_v42 = vcombine.low %v101_v30, %v105_v31 }
  0x42   :  { %v113_v39 = vld [vmem:[#allocation5 + $0x160] sm:$0xff]  ;;  %v114_v41 = vld [vmem:[#allocation5 + $0x168] sm:$0xff]  ;;  %v4576_v43 = vcombine.low %v102_v32, %v106_v33 }
  0x43   :  { %v4583_v44 = vcombine.high %v109_v38, %v113_v39  ;;  %v4585_v45 = vcombine.high %v110_v40, %v114_v41  ;;  %v117_v46 = vld [vmem:[#allocation5 + $0x180] sm:$0xff]  ;;  %v118_v48 = vld [vmem:[#allocation5 + $0x188] sm:$0xff]  ;;  %v4582_v50 = vcombine.low %v109_v38, %v113_v39  ;;  %v4584_v51 = vcombine.low %v110_v40, %v114_v41 }
  0x44   :  { %3214 = vmatpush1.bf16.msra.mxu0 %v4558_v26  ;;  %3418 = vmatpush1.bf16.msra.mxu1 %v4560_v27  ;;  %v121_v47 = vld [vmem:[#allocation5 + $0x1a0] sm:$0xff]  ;;  %v122_v49 = vld [vmem:[#allocation5 + $0x1a8] sm:$0xff] }
  0x45   :  { %3215 = vmatprep.subr.bf16.mxu0 %v4567_v28  ;;  %3419 = vmatprep.subr.bf16.mxu1 %v4569_v29  ;;  %v4591_v52 = vcombine.high %v117_v46, %v121_v47  ;;  %v5479_v53 = vld [vmem:[#allocation2] sm:$0xff]  ;;  %v4593_v55 = vcombine.high %v118_v48, %v122_v49  ;;  %v126_v59 = vld [vmem:[#allocation5 + $0x1c8] sm:$0xff]  ;;  %v4590_v61 = vcombine.low %v117_v46, %v121_v47 }
  0x46   :  { %v5481_v54 = vld [vmem:[#allocation2 + $0x20] sm:$0xff]  ;;  %v130_v60 = vld [vmem:[#allocation5 + $0x1e8] sm:$0xff]  ;;  %v4592_v62 = vcombine.low %v118_v48, %v122_v49 }
  0x47   :  { %v125_v56 = vld [vmem:[#allocation5 + $0x1c0] sm:$0xff]  ;;  %v5485_v58 = vcombine.high %v5479_v53, %v5481_v54  ;;  %v4601_v0 = vcombine.high %v126_v59, %v130_v60  ;;  %v134_v3 = vld [vmem:[#allocation5 + $0x208] sm:$0xff]  ;;  %v4600_v6 = vcombine.low %v126_v59, %v130_v60 }
  0x48   :  { %3216 = vmatpush1.bf16.msra.mxu0 %v4566_v34  ;;  %3420 = vmatpush1.bf16.msra.mxu1 %v4568_v35  ;;  %v129_v57 = vld [vmem:[#allocation5 + $0x1e0] sm:$0xff]  ;;  %v138_v4 = vld [vmem:[#allocation5 + $0x228] sm:$0xff] }
  0x49   :  { %3217 = vmatprep.subr.bf16.mxu0 %v4575_v36  ;;  %3421 = vmatprep.subr.bf16.mxu1 %v4577_v37  ;;  %v4599_v63 = vcombine.high %v125_v56, %v129_v57  ;;  %v133_v1 = vld [vmem:[#allocation5 + $0x200] sm:$0xff]  ;;  %v4598_v5 = vcombine.low %v125_v56, %v129_v57  ;;  %v4609_v8 = vcombine.high %v134_v3, %v138_v4  ;;  %v142_v11 = vld [vmem:[#allocation5 + $0x248] sm:$0xff] }
  0x4a   :  { %3241 = vmatprep.mubr.bf16.mxu0 %v5485_v58  ;;  %v137_v2 = vld [vmem:[#allocation5 + $0x220] sm:$0xff]  ;;  %3445 = vmatprep.mubr.bf16.mxu1 %v5485_v58  ;;  %v146_v12 = vld [vmem:[#allocation5 + $0x268] sm:$0xff]  ;;  %v4608_v14 = vcombine.low %v134_v3, %v138_v4 }
  0x4b   :  { %v4607_v7 = vcombine.high %v133_v1, %v137_v2  ;;  %v141_v9 = vld [vmem:[#allocation5 + $0x240] sm:$0xff]  ;;  %v4606_v13 = vcombine.low %v133_v1, %v137_v2  ;;  %v4617_v16 = vcombine.high %v142_v11, %v146_v12  ;;  %v150_v19 = vld [vmem:[#allocation5 + $0x288] sm:$0xff]  ;;  %v4616_v22 = vcombine.low %v142_v11, %v146_v12 }
  0x4c   :  { %3218 = vmatpush1.bf16.msra.mxu0 %v4574_v42  ;;  %3422 = vmatpush1.bf16.msra.mxu1 %v4576_v43  ;;  %v145_v10 = vld [vmem:[#allocation5 + $0x260] sm:$0xff]  ;;  %v154_v20 = vld [vmem:[#allocation5 + $0x2a8] sm:$0xff] }
  0x4d   :  { %3219 = vmatprep.subr.bf16.mxu0 %v4583_v44  ;;  %3423 = vmatprep.subr.bf16.mxu1 %v4585_v45  ;;  %v4615_v15 = vcombine.high %v141_v9, %v145_v10  ;;  %v149_v17 = vld [vmem:[#allocation5 + $0x280] sm:$0xff]  ;;  %v4614_v21 = vcombine.low %v141_v9, %v145_v10  ;;  %v4625_v24 = vcombine.high %v150_v19, %v154_v20  ;;  %v158_v27 = vld [vmem:[#allocation5 + $0x2c8] sm:$0xff] }
  0x4e   :  { %v153_v18 = vld [vmem:[#allocation5 + $0x2a0] sm:$0xff]  ;;  %v162_v28 = vld [vmem:[#allocation5 + $0x2e8] sm:$0xff]  ;;  %v4624_v30 = vcombine.low %v150_v19, %v154_v20 }
  0x4f   :  { %v4623_v23 = vcombine.high %v149_v17, %v153_v18  ;;  %v157_v25 = vld [vmem:[#allocation5 + $0x2c0] sm:$0xff]  ;;  %v4622_v29 = vcombine.low %v149_v17, %v153_v18  ;;  %v4633_v32 = vcombine.high %v158_v27, %v162_v28  ;;  %v166_v35 = vld [vmem:[#allocation5 + $0x308] sm:$0xff]  ;;  %v4632_v38 = vcombine.low %v158_v27, %v162_v28 }
  0x50   :  { %3220 = vmatpush1.bf16.msra.mxu0 %v4582_v50  ;;  %3424 = vmatpush1.bf16.msra.mxu1 %v4584_v51  ;;  %v161_v26 = vld [vmem:[#allocation5 + $0x2e0] sm:$0xff]  ;;  %v170_v36 = vld [vmem:[#allocation5 + $0x328] sm:$0xff] }
  0x51   :  { %3221 = vmatprep.subr.bf16.mxu0 %v4591_v52  ;;  %3425 = vmatprep.subr.bf16.mxu1 %v4593_v55  ;;  %v4631_v31 = vcombine.high %v157_v25, %v161_v26  ;;  %v165_v33 = vld [vmem:[#allocation5 + $0x300] sm:$0xff]  ;;  %v4630_v37 = vcombine.low %v157_v25, %v161_v26  ;;  %v4641_v40 = vcombine.high %v166_v35, %v170_v36  ;;  %v174_v43 = vld [vmem:[#allocation5 + $0x348] sm:$0xff] }
  0x52   :  { %v169_v34 = vld [vmem:[#allocation5 + $0x320] sm:$0xff]  ;;  %v178_v44 = vld [vmem:[#allocation5 + $0x368] sm:$0xff]  ;;  %v4640_v46 = vcombine.low %v166_v35, %v170_v36 }
  0x53   :  { %v4639_v39 = vcombine.high %v165_v33, %v169_v34  ;;  %v173_v41 = vld [vmem:[#allocation5 + $0x340] sm:$0xff]  ;;  %v4638_v45 = vcombine.low %v165_v33, %v169_v34  ;;  %v4649_v48 = vcombine.high %v174_v43, %v178_v44  ;;  %v182_v51 = vld [vmem:[#allocation5 + $0x388] sm:$0xff]  ;;  %v4648_v56 = vcombine.low %v174_v43, %v178_v44 }
  0x54   :  { %3222 = vmatpush1.bf16.msra.mxu0 %v4590_v61  ;;  %3426 = vmatpush1.bf16.msra.mxu1 %v4592_v62  ;;  %v177_v42 = vld [vmem:[#allocation5 + $0x360] sm:$0xff]  ;;  %v186_v52 = vld [vmem:[#allocation5 + $0x3a8] sm:$0xff] }
  0x55   :  { %3223 = vmatprep.subr.bf16.mxu0 %v4599_v63  ;;  %3427 = vmatprep.subr.bf16.mxu1 %v4601_v0  ;;  %v4647_v47 = vcombine.high %v173_v41, %v177_v42  ;;  %v181_v49 = vld [vmem:[#allocation5 + $0x380] sm:$0xff]  ;;  %v4646_v55 = vcombine.low %v173_v41, %v177_v42  ;;  %v4657_v59 = vcombine.high %v182_v51, %v186_v52  ;;  %v190_v62 = vld [vmem:[#allocation5 + $0x3c8] sm:$0xff] }
  0x56   :  { %v185_v50 = vld [vmem:[#allocation5 + $0x3a0] sm:$0xff]  ;;  %v194_v63 = vld [vmem:[#allocation5 + $0x3e8] sm:$0xff]  ;;  %v4656_v1 = vcombine.low %v182_v51, %v186_v52 }
  0x57   :  { %v4655_v57 = vcombine.high %v181_v49, %v185_v50  ;;  %v189_v60 = vld [vmem:[#allocation5 + $0x3c0] sm:$0xff]  ;;  %v4654_v0 = vcombine.low %v181_v49, %v185_v50  ;;  %v4665_v3 = vcombine.high %v190_v62, %v194_v63  ;;  %v4664_v9 = vcombine.low %v190_v62, %v194_v63  ;;  %v214_v25 = vld [vmem:[#allocation5 + $0x488] sm:$0xff] }
  0x58   :  { %3224 = vmatpush1.bf16.msra.mxu0 %v4598_v5  ;;  %3428 = vmatpush1.bf16.msra.mxu1 %v4600_v6  ;;  %v193_v61 = vld [vmem:[#allocation5 + $0x3e0] sm:$0xff]  ;;  %v198_v6 = vld [vmem:[#allocation5 + $0x408] sm:$0xff] }
  0x59   :  { %3225 = vmatprep.subr.bf16.mxu0 %v4607_v7  ;;  %3429 = vmatprep.subr.bf16.mxu1 %v4609_v8  ;;  %v4663_v2 = vcombine.high %v189_v60, %v193_v61  ;;  %v197_v4 = vld [vmem:[#allocation5 + $0x400] sm:$0xff]  ;;  %v202_v7 = vld [vmem:[#allocation5 + $0x428] sm:$0xff]  ;;  %v4662_v8 = vcombine.low %v189_v60, %v193_v61 }
  0x5a   :  { %v201_v5 = vld [vmem:[#allocation5 + $0x420] sm:$0xff]  ;;  %v4673_v11 = vcombine.high %v198_v6, %v202_v7  ;;  %v4672_v19 = vcombine.low %v198_v6, %v202_v7  ;;  %v5500_v34 = vld [vmem:[#allocation2 + $0x28] sm:$0xff] }
  0x5b   :  { %v4671_v10 = vcombine.high %v197_v4, %v201_v5  ;;  %v205_v12 = vld [vmem:[#allocation5 + $0x440] sm:$0xff]  ;;  %v4670_v18 = vcombine.low %v197_v4, %v201_v5  ;;  %v230_v41 = vld [vmem:[#allocation5 + $0x508] sm:$0xff] }
  0x5c   :  { %3226 = vmatpush1.bf16.msra.mxu0 %v4606_v13  ;;  %3430 = vmatpush1.bf16.msra.mxu1 %v4608_v14  ;;  %v209_v13 = vld [vmem:[#allocation5 + $0x460] sm:$0xff]  ;;  %v5491_v14 = vcombine.low %v5479_v53, %v5481_v54  ;;  %v218_v53 = vld [vmem:[#allocation5 + $0x4a8] sm:$0xff] }
  0x5d   :  { %3227 = vmatprep.subr.bf16.mxu0 %v4615_v15  ;;  %3431 = vmatprep.subr.bf16.mxu1 %v4617_v16  ;;  %v206_v15 = vld [vmem:[#allocation5 + $0x448] sm:$0xff]  ;;  %v65_v17 = vld [vmem:[#allocation2 + $0x40] sm:$0xff]  ;;  %v4679_v20 = vcombine.high %v205_v12, %v209_v13  ;;  %v4678_v54 = vcombine.low %v205_v12, %v209_v13  ;;  %v4689_v33 = vcombine.high %v214_v25, %v218_v53 }
  0x5e   :  { %v210_v16 = vld [vmem:[#allocation5 + $0x468] sm:$0xff]  ;;  %v221_v26 = vld [vmem:[#allocation5 + $0x4c0] sm:$0xff]  ;;  %v5503_v35 = vcombine.low %v65_v17, %v65_v17 }
  0x5f   :  { %v225_v27 = vld [vmem:[#allocation5 + $0x4e0] sm:$0xff]  ;;  %v4680_v28 = vcombine.low %v206_v15, %v210_v16  ;;  %v234_v43 = vld [vmem:[#allocation5 + $0x528] sm:$0xff] }
  0x60   :  { %3228 = vmatpush1.bf16.msra.mxu0 %v4614_v21  ;;  %3432 = vmatpush1.bf16.msra.mxu1 %v4616_v22  ;;  %v4681_v21 = vcombine.high %v206_v15, %v210_v16  ;;  %v213_v22 = vld [vmem:[#allocation5 + $0x480] sm:$0xff]  ;;  %v238_v50 = vld [vmem:[#allocation5 + $0x548] sm:$0xff]  ;;  %v4705_v51 = vcombine.high %v230_v41, %v234_v43 }
  0x61   :  { %3229 = vmatprep.subr.bf16.mxu0 %v4623_v23  ;;  %3433 = vmatprep.subr.bf16.mxu1 %v4625_v24  ;;  %v217_v23 = vld [vmem:[#allocation5 + $0x4a0] sm:$0xff]  ;;  %v5493_v24 = vcombine.high %v65_v17, %v65_v17  ;;  %v242_v52 = vld [vmem:[#allocation5 + $0x568] sm:$0xff] }
  0x62   :  { %v4686_v36 = vcombine.low %v213_v22, %v217_v23  ;;  %v241_v49 = vld [vmem:[#allocation5 + $0x560] sm:$0xff]  ;;  %v246_v61 = vld [vmem:[#allocation5 + $0x588] sm:$0xff]  ;;  %v4713_v62 = vcombine.high %v238_v50, %v242_v52 }
  0x63   :  { %v249_v60 = vld [vmem:[#allocation5 + $0x5a0] sm:$0xff]  ;;  %v250_v63 = vld [vmem:[#allocation5 + $0x5a8] sm:$0xff] }
  0x64   :  { %3230 = vmatpush1.bf16.msra.mxu0 %v4622_v29  ;;  %3434 = vmatpush1.bf16.msra.mxu1 %v4624_v30  ;;  %v4687_v29 = vcombine.high %v213_v22, %v217_v23  ;;  %v222_v30 = vld [vmem:[#allocation5 + $0x4c8] sm:$0xff]  ;;  %v257_v4 = vld [vmem:[#allocation5 + $0x5e0] sm:$0xff]  ;;  %v4721_v6 = vcombine.high %v246_v61, %v250_v63 }
  0x65   :  { %3231 = vmatprep.subr.bf16.mxu0 %v4631_v31  ;;  %3435 = vmatprep.subr.bf16.mxu1 %v4633_v32  ;;  %v226_v31 = vld [vmem:[#allocation5 + $0x4e8] sm:$0xff]  ;;  %v265_v12 = vld [vmem:[#allocation5 + $0x620] sm:$0xff] }
  0x66   :  { %v5497_v32 = vld [vmem:[#allocation2 + $0x8] sm:$0xff]  ;;  %v4697_v42 = vcombine.high %v222_v30, %v226_v31 }
  0x67   :  { %v5507_v44 = vcombine.high %v5497_v32, %v5500_v34  ;;  %v254_v5 = vld [vmem:[#allocation5 + $0x5c8] sm:$0xff] }
  0x68   :  { %3232 = vmatpush1.bf16.msra.mxu0 %v4630_v37  ;;  %3436 = vmatpush1.bf16.msra.mxu1 %v4632_v38  ;;  %v4688_v37 = vcombine.low %v214_v25, %v218_v53  ;;  %v4695_v38 = vcombine.high %v221_v26, %v225_v27  ;;  %v258_v7 = vld [vmem:[#allocation5 + $0x5e8] sm:$0xff] }
  0x69   :  { %3233 = vmatprep.subr.bf16.mxu0 %v4639_v39  ;;  %3437 = vmatprep.subr.bf16.mxu1 %v4641_v40  ;;  %v229_v39 = vld [vmem:[#allocation5 + $0x500] sm:$0xff]  ;;  %v262_v13 = vld [vmem:[#allocation5 + $0x608] sm:$0xff]  ;;  %v4729_v15 = vcombine.high %v254_v5, %v258_v7 }
  0x6a   :  { %v233_v40 = vld [vmem:[#allocation5 + $0x520] sm:$0xff]  ;;  %v266_v16 = vld [vmem:[#allocation5 + $0x628] sm:$0xff] }
  0x6b   :  { %v270_v22 = vld [vmem:[#allocation5 + $0x648] sm:$0xff]  ;;  %v4737_v23 = vcombine.high %v262_v13, %v266_v16 }
  0x6c   :  { %3234 = vmatpush1.bf16.msra.mxu0 %v4638_v45  ;;  %3438 = vmatpush1.bf16.msra.mxu1 %v4640_v46  ;;  %v4694_v45 = vcombine.low %v221_v26, %v225_v27  ;;  %v4696_v46 = vcombine.low %v222_v30, %v226_v31  ;;  %v274_v25 = vld [vmem:[#allocation5 + $0x668] sm:$0xff]  ;;  %v277_v27 = vld [vmem:[#allocation5 + $0x680] sm:$0xff] }
  0x6d   :  { %3235 = vmatprep.subr.bf16.mxu0 %v4647_v47  ;;  %3439 = vmatprep.subr.bf16.mxu1 %v4649_v48  ;;  %v4703_v47 = vcombine.high %v229_v39, %v233_v40  ;;  %v237_v48 = vld [vmem:[#allocation5 + $0x540] sm:$0xff]  ;;  %v4745_v30 = vcombine.high %v270_v22, %v274_v25  ;;  %v282_v31 = vld [vmem:[#allocation5 + $0x6a8] sm:$0xff] }
  0x70   :  { %3236 = vmatpush1.bf16.msra.mxu0 %v4646_v55  ;;  %3440 = vmatpush1.bf16.msra.mxu1 %v4648_v56  ;;  %v4702_v55 = vcombine.low %v229_v39, %v233_v40  ;;  %v4704_v56 = vcombine.low %v230_v41, %v234_v43  ;;  %v285_v39 = vld [vmem:[#allocation5 + $0x6c0] sm:$0xff]  ;;  %v286_v41 = vld [vmem:[#allocation5 + $0x6c8] sm:$0xff] }
  0x71   :  { %3237 = vmatprep.subr.bf16.mxu0 %v4655_v57  ;;  %3441 = vmatprep.subr.bf16.mxu1 %v4657_v59  ;;  %v4711_v57 = vcombine.high %v237_v48, %v241_v49  ;;  %v245_v59 = vld [vmem:[#allocation5 + $0x580] sm:$0xff] }
  0x72   :  { %v289_v40 = vld [vmem:[#allocation5 + $0x6e0] sm:$0xff] }
  0x74   :  { %3238 = vmatpush1.bf16.msra.mxu0 %v4654_v0  ;;  %3442 = vmatpush1.bf16.msra.mxu1 %v4656_v1  ;;  %v4710_v0 = vcombine.low %v237_v48, %v241_v49  ;;  %v4712_v1 = vcombine.low %v238_v50, %v242_v52  ;;  %v293_v48 = vld [vmem:[#allocation5 + $0x700] sm:$0xff]  ;;  %v294_v50 = vld [vmem:[#allocation5 + $0x708] sm:$0xff]  ;;  %v4758_v52 = vcombine.low %v285_v39, %v289_v40 }
  0x75   :  { %3239 = vmatprep.subr.bf16.mxu0 %v4663_v2  ;;  %3443 = vmatprep.subr.bf16.mxu1 %v4665_v3  ;;  %v4719_v2 = vcombine.high %v245_v59, %v249_v60  ;;  %v253_v3 = vld [vmem:[#allocation5 + $0x5c0] sm:$0xff] }
  0x76   :  { %v4726_v17 = vcombine.low %v253_v3, %v257_v4  ;;  %v297_v49 = vld [vmem:[#allocation5 + $0x720] sm:$0xff] }
  0x78   :  { %3240 = vmatpush1.bf16.msra.mxu0 %v4662_v8  ;;  %3444 = vmatpush1.bf16.msra.mxu1 %v4664_v9  ;;  %v4718_v8 = vcombine.low %v245_v59, %v249_v60  ;;  %v4720_v9 = vcombine.low %v246_v61, %v250_v63  ;;  %v301_v59 = vld [vmem:[#allocation5 + $0x740] sm:$0xff]  ;;  %v302_v61 = vld [vmem:[#allocation5 + $0x748] sm:$0xff]  ;;  %v4766_v63 = vcombine.low %v293_v48, %v297_v49 }
  0x79   :  { %3260 = vmatprep.subr.bf16.mxu0 %v4671_v10  ;;  %3464 = vmatprep.subr.bf16.mxu1 %v4673_v11  ;;  %v4727_v10 = vcombine.high %v253_v3, %v257_v4  ;;  %v261_v11 = vld [vmem:[#allocation5 + $0x600] sm:$0xff] }
  0x7a   :  { %v4734_v53 = vcombine.low %v261_v11, %v265_v12  ;;  %v305_v60 = vld [vmem:[#allocation5 + $0x760] sm:$0xff] }
  0x7b   :  { %3242 = vmatmul.mubr.bf16.vlgmr.msra.gmra.mrb[0].mxu0 %v5491_v14  ;;  %3446 = vmatmul.mubr.bf16.vlgmr.msra.gmra.mrb[0].mxu1 %v5491_v14  ;;  %v309_v3 = vld [vmem:[#allocation5 + $0x780] sm:$0xff] }
  0x7c   :  { %3261 = vmatpush1.bf16.msra.mxu0 %v4670_v18  ;;  %3465 = vmatpush1.bf16.msra.mxu1 %v4672_v19  ;;  %v4728_v18 = vcombine.low %v254_v5, %v258_v7  ;;  %v4735_v19 = vcombine.high %v261_v11, %v265_v12  ;;  %v313_v4 = vld [vmem:[#allocation5 + $0x7a0] sm:$0xff]  ;;  %v310_v5 = vld [vmem:[#allocation5 + $0x788] sm:$0xff]  ;;  %v4774_v7 = vcombine.low %v301_v59, %v305_v60 }
  0x7d   :  { %3262 = vmatprep.subr.bf16.mxu0 %v4679_v20  ;;  %3466 = vmatprep.subr.bf16.mxu1 %v4681_v21  ;;  %v269_v20 = vld [vmem:[#allocation5 + $0x640] sm:$0xff] }
  0x7e   :  { %3251 = vmatprep.mubr.bf16.mxu0 %v5493_v24  ;;  %3455 = vmatprep.mubr.bf16.mxu1 %v5493_v24  ;;  %v273_v21 = vld [vmem:[#allocation5 + $0x660] sm:$0xff] }
  0x7f   :  { %v4743_v26 = vcombine.high %v269_v20, %v273_v21  ;;  %v317_v11 = vld [vmem:[#allocation5 + $0x7c0] sm:$0xff] }
  0x80   :  { %3263 = vmatpush1.bf16.msra.mxu0 %v4678_v54  ;;  %3467 = vmatpush1.bf16.msra.mxu1 %v4680_v28  ;;  %v4736_v54 = vcombine.low %v262_v13, %v266_v16  ;;  %v281_v28 = vld [vmem:[#allocation5 + $0x6a0] sm:$0xff]  ;;  %v318_v13 = vld [vmem:[#allocation5 + $0x7c8] sm:$0xff]  ;;  %v4782_v16 = vcombine.low %v309_v3, %v313_v4 }
  0x81   :  { %3264 = vmatprep.subr.bf16.mxu0 %v4687_v29  ;;  %3468 = vmatprep.subr.bf16.mxu1 %v4689_v33  ;;  %v278_v29 = vld [vmem:[#allocation5 + $0x688] sm:$0xff]  ;;  %v4742_v33 = vcombine.low %v269_v20, %v273_v21  ;;  %v4750_v43 = vcombine.low %v277_v27, %v281_v28  ;;  %v321_v12 = vld [vmem:[#allocation5 + $0x7e0] sm:$0xff] }
  0x82   :  { %v325_v20 = vld [vmem:[#allocation5 + $0x800] sm:$0xff] }
  0x83   :  { %3252 = vmatmul.mubr.bf16.gmra.mrb[4].mxu0 %v5503_v35  ;;  %3456 = vmatmul.mubr.bf16.gmra.mrb[4].mxu1 %v5503_v35  ;;  %v329_v21 = vld [vmem:[#allocation5 + $0x820] sm:$0xff] }
  0x84   :  { %3265 = vmatpush1.bf16.msra.mxu0 %v4686_v36  ;;  %3469 = vmatpush1.bf16.msra.mxu1 %v4688_v37  ;;  %v4744_v36 = vcombine.low %v270_v22, %v274_v25  ;;  %v4751_v37 = vcombine.high %v277_v27, %v281_v28  ;;  %v326_v22 = vld [vmem:[#allocation5 + $0x808] sm:$0xff]  ;;  %v4790_v25 = vcombine.low %v317_v11, %v321_v12  ;;  %v333_v27 = vld [vmem:[#allocation5 + $0x840] sm:$0xff] }
  0x85   :  { %3266 = vmatprep.subr.bf16.mxu0 %v4695_v38  ;;  %3470 = vmatprep.subr.bf16.mxu1 %v4697_v42  ;;  %v4753_v38 = vcombine.high %v278_v29, %v282_v31  ;;  %v290_v42 = vld [vmem:[#allocation5 + $0x6e8] sm:$0xff]  ;;  %v337_v28 = vld [vmem:[#allocation5 + $0x860] sm:$0xff] }
  0x86   :  { %3292 = vmatprep.mubr.bf16.mxu0 %v5507_v44  ;;  %3496 = vmatprep.mubr.bf16.mxu1 %v5507_v44 }
  0x88   :  { %3267 = vmatpush1.bf16.msra.mxu0 %v4694_v45  ;;  %3471 = vmatpush1.bf16.msra.mxu1 %v4696_v46  ;;  %v4752_v45 = vcombine.low %v278_v29, %v282_v31  ;;  %v4759_v46 = vcombine.high %v285_v39, %v289_v40  ;;  %v5515_v29 = vcombine.low %v5497_v32, %v5500_v34  ;;  %v338_v31 = vld [vmem:[#allocation5 + $0x868] sm:$0xff]  ;;  %v341_v40 = vld [vmem:[#allocation5 + $0x880] sm:$0xff] }
  0x89   :  { %3268 = vmatprep.subr.bf16.mxu0 %v4703_v47  ;;  %3472 = vmatprep.subr.bf16.mxu1 %v4705_v51  ;;  %v4761_v47 = vcombine.high %v286_v41, %v290_v42  ;;  %v298_v51 = vld [vmem:[#allocation5 + $0x728] sm:$0xff]  ;;  %v4806_v34 = vcombine.low %v333_v27, %v337_v28 }
  0x8a   :  { %v346_v32 = vld [vmem:[#allocation5 + $0x8a8] sm:$0xff] }
  0x8c   :  { %3269 = vmatpush1.bf16.msra.mxu0 %v4702_v55  ;;  %3473 = vmatpush1.bf16.msra.mxu1 %v4704_v56  ;;  %v4760_v55 = vcombine.low %v286_v41, %v290_v42  ;;  %v4767_v56 = vcombine.high %v293_v48, %v297_v49  ;;  %v345_v41 = vld [vmem:[#allocation5 + $0x8a0] sm:$0xff] }
  0x8d   :  { %3270 = vmatprep.subr.bf16.mxu0 %v4711_v57  ;;  %3474 = vmatprep.subr.bf16.mxu1 %v4713_v62  ;;  %v4769_v57 = vcombine.high %v294_v50, %v298_v51  ;;  %v306_v62 = vld [vmem:[#allocation5 + $0x768] sm:$0xff]  ;;  %v349_v48 = vld [vmem:[#allocation5 + $0x8c0] sm:$0xff] }
  0x8e   :  { %v353_v49 = vld [vmem:[#allocation5 + $0x8e0] sm:$0xff] }
  0x90   :  { %3271 = vmatpush1.bf16.msra.mxu0 %v4710_v0  ;;  %3475 = vmatpush1.bf16.msra.mxu1 %v4712_v1  ;;  %v4768_v0 = vcombine.low %v294_v50, %v298_v51  ;;  %v4775_v1 = vcombine.high %v301_v59, %v305_v60  ;;  %v350_v50 = vld [vmem:[#allocation5 + $0x8c8] sm:$0xff]  ;;  %v4823_v60 = vcombine.high %v349_v48, %v353_v49 }
  0x91   :  { %3272 = vmatprep.subr.bf16.mxu0 %v4719_v2  ;;  %3476 = vmatprep.subr.bf16.mxu1 %v4721_v6  ;;  %v4777_v2 = vcombine.high %v302_v61, %v306_v62  ;;  %v314_v6 = vld [vmem:[#allocation5 + $0x7a8] sm:$0xff] }
  0x92   :  { %v354_v51 = vld [vmem:[#allocation5 + $0x8e8] sm:$0xff] }
  0x94   :  { %3273 = vmatpush1.bf16.msra.mxu0 %v4718_v8  ;;  %3477 = vmatpush1.bf16.msra.mxu1 %v4720_v9  ;;  %v4776_v8 = vcombine.low %v302_v61, %v306_v62  ;;  %v4783_v9 = vcombine.high %v309_v3, %v313_v4  ;;  %v4825_v61 = vcombine.high %v350_v50, %v354_v51  ;;  %v357_v62 = vld [vmem:[#allocation5 + $0x900] sm:$0xff] }
  0x95   :  { %3274 = vmatprep.subr.bf16.mxu0 %v4727_v10  ;;  %3478 = vmatprep.subr.bf16.mxu1 %v4729_v15  ;;  %v4785_v10 = vcombine.high %v310_v5, %v314_v6  ;;  %v322_v15 = vld [vmem:[#allocation5 + $0x7e8] sm:$0xff]  ;;  %v4822_v3 = vcombine.low %v349_v48, %v353_v49  ;;  %v4824_v4 = vcombine.low %v350_v50, %v354_v51  ;;  %v405_v51 = vld [vmem:[#allocation5 + $0xa80] sm:$0xff] }
  0x98   :  { %3275 = vmatpush1.bf16.msra.mxu0 %v4726_v17  ;;  %3479 = vmatpush1.bf16.msra.mxu1 %v4728_v18  ;;  %v4784_v17 = vcombine.low %v310_v5, %v314_v6  ;;  %v4791_v18 = vcombine.high %v317_v11, %v321_v12 }
  0x99   :  { %3276 = vmatprep.subr.bf16.mxu0 %v4735_v19  ;;  %3480 = vmatprep.subr.bf16.mxu1 %v4737_v23  ;;  %v4793_v19 = vcombine.high %v318_v13, %v322_v15  ;;  %v330_v23 = vld [vmem:[#allocation5 + $0x828] sm:$0xff] }
  0x9c   :  { %3277 = vmatpush1.bf16.msra.mxu0 %v4734_v53  ;;  %3481 = vmatpush1.bf16.msra.mxu1 %v4736_v54  ;;  %v4792_v53 = vcombine.low %v318_v13, %v322_v15  ;;  %v4799_v54 = vcombine.high %v325_v20, %v329_v21 }
  0x9d   :  { %3278 = vmatprep.subr.bf16.mxu0 %v4743_v26  ;;  %3482 = vmatprep.subr.bf16.mxu1 %v4745_v30  ;;  %v4801_v26 = vcombine.high %v326_v22, %v330_v23  ;;  %v334_v30 = vld [vmem:[#allocation5 + $0x848] sm:$0xff] }
  0x9e   :  { %v4809_v39 = vcombine.high %v334_v30, %v338_v31 }
  0xa0   :  { %3279 = vmatpush1.bf16.msra.mxu0 %v4742_v33  ;;  %3483 = vmatpush1.bf16.msra.mxu1 %v4744_v36  ;;  %v66_v33 = vld [vmem:[#allocation2 + $0x48] sm:$0xff]  ;;  %v4798_v36 = vcombine.low %v325_v20, %v329_v21 }
  0xa1   :  { %3280 = vmatprep.subr.bf16.mxu0 %v4751_v37  ;;  %3484 = vmatprep.subr.bf16.mxu1 %v4753_v38  ;;  %v4800_v37 = vcombine.low %v326_v22, %v330_v23  ;;  %v4807_v38 = vcombine.high %v333_v27, %v337_v28  ;;  %v5517_v42 = vcombine.high %v66_v33, %v66_v33 }
  0xa4   :  { %3281 = vmatpush1.bf16.msra.mxu0 %v4750_v43  ;;  %3485 = vmatpush1.bf16.msra.mxu1 %v4752_v45  ;;  %v342_v43 = vld [vmem:[#allocation5 + $0x888] sm:$0xff]  ;;  %v4808_v45 = vcombine.low %v334_v30, %v338_v31 }
  0xa5   :  { %3282 = vmatprep.subr.bf16.mxu0 %v4759_v46  ;;  %3486 = vmatprep.subr.bf16.mxu1 %v4761_v47  ;;  %v4815_v46 = vcombine.high %v341_v40, %v345_v41  ;;  %v4817_v47 = vcombine.high %v342_v43, %v346_v32  ;;  %v4816_v59 = vcombine.low %v342_v43, %v346_v32  ;;  %v397_v32 = vld [vmem:[#allocation5 + $0xa40] sm:$0xff] }
  0xa8   :  { %3283 = vmatpush1.bf16.msra.mxu0 %v4758_v52  ;;  %3487 = vmatpush1.bf16.msra.mxu1 %v4760_v55  ;;  %v5523_v52 = vcombine.low %v66_v33, %v66_v33  ;;  %v5525_v55 = vld [vmem:[#allocation2 + $0x10] sm:$0xff]  ;;  %v389_v33 = vld [vmem:[#allocation5 + $0xa00] sm:$0xff] }
  0xa9   :  { %3284 = vmatprep.subr.bf16.mxu0 %v4767_v56  ;;  %3488 = vmatprep.subr.bf16.mxu1 %v4769_v57  ;;  %v5527_v56 = vld [vmem:[#allocation2 + $0x30] sm:$0xff]  ;;  %v4814_v57 = vcombine.low %v341_v40, %v345_v41 }
  0xac   :  { %3285 = vmatpush1.bf16.msra.mxu0 %v4766_v63  ;;  %3489 = vmatpush1.bf16.msra.mxu1 %v4768_v0  ;;  %v361_v63 = vld [vmem:[#allocation5 + $0x920] sm:$0xff]  ;;  %v5531_v0 = vcombine.high %v5525_v55, %v5527_v56 }
  0xad   :  { %3286 = vmatprep.subr.bf16.mxu0 %v4775_v1  ;;  %3490 = vmatprep.subr.bf16.mxu1 %v4777_v2  ;;  %v358_v1 = vld [vmem:[#allocation5 + $0x908] sm:$0xff]  ;;  %v4831_v5 = vcombine.high %v357_v62, %v361_v63  ;;  %v4830_v11 = vcombine.low %v357_v62, %v361_v63 }
  0xae   :  { %v362_v2 = vld [vmem:[#allocation5 + $0x928] sm:$0xff] }
  0xaf   :  { %v4833_v6 = vcombine.high %v358_v1, %v362_v2  ;;  %v4832_v12 = vcombine.low %v358_v1, %v362_v2  ;;  %v413_v2 = vld [vmem:[#allocation5 + $0xac0] sm:$0xff] }
  0xb0   :  { %3287 = vmatpush1.bf16.msra.mxu0 %v4774_v7  ;;  %3491 = vmatpush1.bf16.msra.mxu1 %v4776_v8  ;;  %v365_v7 = vld [vmem:[#allocation5 + $0x940] sm:$0xff] }
  0xb1   :  { %3288 = vmatprep.subr.bf16.mxu0 %v4783_v9  ;;  %3492 = vmatprep.subr.bf16.mxu1 %v4785_v10  ;;  %v369_v8 = vld [vmem:[#allocation5 + $0x960] sm:$0xff]  ;;  %v366_v9 = vld [vmem:[#allocation5 + $0x948] sm:$0xff] }
  0xb2   :  { %v370_v10 = vld [vmem:[#allocation5 + $0x968] sm:$0xff]  ;;  %v4839_v13 = vcombine.high %v365_v7, %v369_v8  ;;  %v4838_v20 = vcombine.low %v365_v7, %v369_v8 }
  0xb3   :  { %v4841_v15 = vcombine.high %v366_v9, %v370_v10  ;;  %v4840_v21 = vcombine.low %v366_v9, %v370_v10  ;;  %v421_v10 = vld [vmem:[#allocation5 + $0xb00] sm:$0xff] }
  0xb4   :  { %3289 = vmatpush1.bf16.msra.mxu0 %v4782_v16  ;;  %3493 = vmatpush1.bf16.msra.mxu1 %v4784_v17  ;;  %v373_v16 = vld [vmem:[#allocation5 + $0x980] sm:$0xff] }
  0xb5   :  { %3290 = vmatprep.subr.bf16.mxu0 %v4791_v18  ;;  %3494 = vmatprep.subr.bf16.mxu1 %v4793_v19  ;;  %v377_v17 = vld [vmem:[#allocation5 + $0x9a0] sm:$0xff]  ;;  %v374_v18 = vld [vmem:[#allocation5 + $0x988] sm:$0xff] }
  0xb6   :  { %v378_v19 = vld [vmem:[#allocation5 + $0x9a8] sm:$0xff]  ;;  %v4847_v22 = vcombine.high %v373_v16, %v377_v17  ;;  %v4846_v27 = vcombine.low %v373_v16, %v377_v17 }
  0xb7   :  { %v4849_v23 = vcombine.high %v374_v18, %v378_v19  ;;  %v4848_v28 = vcombine.low %v374_v18, %v378_v19  ;;  %v429_v19 = vld [vmem:[#allocation5 + $0xb40] sm:$0xff] }
  0xb8   :  { %3291 = vmatpush1.bf16.msra.mxu0 %v4790_v25  ;;  %3495 = vmatpush1.bf16.msra.mxu1 %v4792_v53  ;;  %v381_v25 = vld [vmem:[#allocation5 + $0x9c0] sm:$0xff] }
  0xb9   :  { %3311 = vmatprep.subr.bf16.mxu0 %v4799_v54  ;;  %3515 = vmatprep.subr.bf16.mxu1 %v4801_v26  ;;  %v385_v53 = vld [vmem:[#allocation5 + $0x9e0] sm:$0xff]  ;;  %v382_v54 = vld [vmem:[#allocation5 + $0x9c8] sm:$0xff] }
  0xba   :  { %v386_v26 = vld [vmem:[#allocation5 + $0x9e8] sm:$0xff]  ;;  %v4855_v30 = vcombine.high %v381_v25, %v385_v53 }
  0xbb   :  { %3293 = vmatmul.mubr.bf16.vlgmr.msra.gmra.mrb[0].mxu0 %v5515_v29  ;;  %3497 = vmatmul.mubr.bf16.vlgmr.msra.gmra.mrb[0].mxu1 %v5515_v29  ;;  %v4857_v31 = vcombine.high %v382_v54, %v386_v26  ;;  %v4856_v40 = vcombine.low %v382_v54, %v386_v26  ;;  %v437_v26 = vld [vmem:[#allocation5 + $0xb80] sm:$0xff] }
  0xbc   :  { %3312 = vmatpush1.bf16.msra.mxu0 %v4798_v36  ;;  %3516 = vmatpush1.bf16.msra.mxu1 %v4800_v37  ;;  %v393_v36 = vld [vmem:[#allocation5 + $0xa20] sm:$0xff]  ;;  %v390_v37 = vld [vmem:[#allocation5 + $0xa08] sm:$0xff] }
  0xbd   :  { %3313 = vmatprep.subr.bf16.mxu0 %v4807_v38  ;;  %3517 = vmatprep.subr.bf16.mxu1 %v4809_v39  ;;  %v394_v38 = vld [vmem:[#allocation5 + $0xa28] sm:$0xff]  ;;  %v4854_v39 = vcombine.low %v381_v25, %v385_v53  ;;  %v4863_v41 = vcombine.high %v389_v33, %v393_v36 }
  0xbe   :  { %3302 = vmatprep.mubr.bf16.mxu0 %v5517_v42  ;;  %3506 = vmatprep.mubr.bf16.mxu1 %v5517_v42  ;;  %v4865_v43 = vcombine.high %v390_v37, %v394_v38  ;;  %v4864_v48 = vcombine.low %v390_v37, %v394_v38  ;;  %v445_v38 = vld [vmem:[#allocation5 + $0xbc0] sm:$0xff] }
  0xc0   :  { %3314 = vmatpush1.bf16.msra.mxu0 %v4806_v34  ;;  %3518 = vmatpush1.bf16.msra.mxu1 %v4808_v45  ;;  %v401_v34 = vld [vmem:[#allocation5 + $0xa60] sm:$0xff]  ;;  %v398_v45 = vld [vmem:[#allocation5 + $0xa48] sm:$0xff] }
  0xc1   :  { %3315 = vmatprep.subr.bf16.mxu0 %v4815_v46  ;;  %3519 = vmatprep.subr.bf16.mxu1 %v4817_v47  ;;  %v402_v46 = vld [vmem:[#allocation5 + $0xa68] sm:$0xff]  ;;  %v4862_v47 = vcombine.low %v389_v33, %v393_v36  ;;  %v4871_v49 = vcombine.high %v397_v32, %v401_v34 }
  0xc2   :  { %v4873_v50 = vcombine.high %v398_v45, %v402_v46  ;;  %v4872_v62 = vcombine.low %v398_v45, %v402_v46  ;;  %v453_v46 = vld [vmem:[#allocation5 + $0xc00] sm:$0xff] }
  0xc3   :  { %3303 = vmatmul.mubr.bf16.gmra.mrb[4].mxu0 %v5523_v52  ;;  %3507 = vmatmul.mubr.bf16.gmra.mrb[4].mxu1 %v5523_v52 }
  0xc4   :  { %3316 = vmatpush1.bf16.msra.mxu0 %v4814_v57  ;;  %3520 = vmatpush1.bf16.msra.mxu1 %v4816_v59  ;;  %v409_v57 = vld [vmem:[#allocation5 + $0xaa0] sm:$0xff]  ;;  %v406_v59 = vld [vmem:[#allocation5 + $0xa88] sm:$0xff] }
  0xc5   :  { %3317 = vmatprep.subr.bf16.mxu0 %v4823_v60  ;;  %3521 = vmatprep.subr.bf16.mxu1 %v4825_v61  ;;  %v410_v60 = vld [vmem:[#allocation5 + $0xaa8] sm:$0xff]  ;;  %v4870_v61 = vcombine.low %v397_v32, %v401_v34  ;;  %v4879_v63 = vcombine.high %v405_v51, %v409_v57 }
  0xc6   :  { %3343 = vmatprep.mubr.bf16.mxu0 %v5531_v0  ;;  %3547 = vmatprep.mubr.bf16.mxu1 %v5531_v0  ;;  %v4881_v1 = vcombine.high %v406_v59, %v410_v60  ;;  %v4880_v7 = vcombine.low %v406_v59, %v410_v60  ;;  %v461_v60 = vld [vmem:[#allocation5 + $0xc40] sm:$0xff] }
  0xc8   :  { %3318 = vmatpush1.bf16.msra.mxu0 %v4822_v3  ;;  %3522 = vmatpush1.bf16.msra.mxu1 %v4824_v4  ;;  %v417_v3 = vld [vmem:[#allocation5 + $0xae0] sm:$0xff]  ;;  %v414_v4 = vld [vmem:[#allocation5 + $0xac8] sm:$0xff] }
  0xc9   :  { %3319 = vmatprep.subr.bf16.mxu0 %v4831_v5  ;;  %3523 = vmatprep.subr.bf16.mxu1 %v4833_v6  ;;  %v418_v5 = vld [vmem:[#allocation5 + $0xae8] sm:$0xff]  ;;  %v4878_v6 = vcombine.low %v405_v51, %v409_v57  ;;  %v4887_v8 = vcombine.high %v413_v2, %v417_v3 }
  0xca   :  { %v4889_v9 = vcombine.high %v414_v4, %v418_v5  ;;  %v4888_v16 = vcombine.low %v414_v4, %v418_v5 }
  0xcc   :  { %3320 = vmatpush1.bf16.msra.mxu0 %v4830_v11  ;;  %3524 = vmatpush1.bf16.msra.mxu1 %v4832_v12  ;;  %v425_v11 = vld [vmem:[#allocation5 + $0xb20] sm:$0xff]  ;;  %v422_v12 = vld [vmem:[#allocation5 + $0xb08] sm:$0xff] }
  0xcd   :  { %3321 = vmatprep.subr.bf16.mxu0 %v4839_v13  ;;  %3525 = vmatprep.subr.bf16.mxu1 %v4841_v15  ;;  %v426_v13 = vld [vmem:[#allocation5 + $0xb28] sm:$0xff]  ;;  %v4886_v15 = vcombine.low %v413_v2, %v417_v3  ;;  %v4895_v17 = vcombine.high %v421_v10, %v425_v11  ;;  %v67_v2 = vld [vmem:[#allocation2 + $0x50] sm:$0xff] }
  0xce   :  { %v4897_v18 = vcombine.high %v422_v12, %v426_v13  ;;  %v4896_v25 = vcombine.low %v422_v12, %v426_v13 }
  0xd0   :  { %3322 = vmatpush1.bf16.msra.mxu0 %v4838_v20  ;;  %3526 = vmatpush1.bf16.msra.mxu1 %v4840_v21  ;;  %v433_v20 = vld [vmem:[#allocation5 + $0xb60] sm:$0xff]  ;;  %v430_v21 = vld [vmem:[#allocation5 + $0xb48] sm:$0xff] }
  0xd1   :  { %3323 = vmatprep.subr.bf16.mxu0 %v4847_v22  ;;  %3527 = vmatprep.subr.bf16.mxu1 %v4849_v23  ;;  %v434_v22 = vld [vmem:[#allocation5 + $0xb68] sm:$0xff]  ;;  %v4894_v23 = vcombine.low %v421_v10, %v425_v11  ;;  %v4903_v53 = vcombine.high %v429_v19, %v433_v20 }
  0xd2   :  { %v4905_v54 = vcombine.high %v430_v21, %v434_v22  ;;  %v4904_v33 = vcombine.low %v430_v21, %v434_v22  ;;  %v470_v10 = vld [vmem:[#allocation5 + $0xc88] sm:$0xff]  ;;  %v5551_v21 = vld [vmem:[#allocation2 + $0x38] sm:$0xff] }
  0xd4   :  { %3324 = vmatpush1.bf16.msra.mxu0 %v4846_v27  ;;  %3528 = vmatpush1.bf16.msra.mxu1 %v4848_v28  ;;  %v441_v27 = vld [vmem:[#allocation5 + $0xba0] sm:$0xff]  ;;  %v438_v28 = vld [vmem:[#allocation5 + $0xb88] sm:$0xff] }
  0xd5   :  { %3325 = vmatprep.subr.bf16.mxu0 %v4855_v30  ;;  %3529 = vmatprep.subr.bf16.mxu1 %v4857_v31  ;;  %v442_v30 = vld [vmem:[#allocation5 + $0xba8] sm:$0xff]  ;;  %v4902_v31 = vcombine.low %v429_v19, %v433_v20  ;;  %v4911_v36 = vcombine.high %v437_v26, %v441_v27  ;;  %v5547_v19 = vcombine.low %v67_v2, %v67_v2  ;;  %v5549_v20 = vld [vmem:[#allocation2 + $0x18] sm:$0xff] }
  0xd6   :  { %v4913_v37 = vcombine.high %v438_v28, %v442_v30  ;;  %v4912_v32 = vcombine.low %v438_v28, %v442_v30  ;;  %v486_v28 = vld [vmem:[#allocation5 + $0xd08] sm:$0xff] }
  0xd7   :  { %v490_v30 = vld [vmem:[#allocation5 + $0xd28] sm:$0xff] }
  0xd8   :  { %3326 = vmatpush1.bf16.msra.mxu0 %v4854_v39  ;;  %3530 = vmatpush1.bf16.msra.mxu1 %v4856_v40  ;;  %v449_v39 = vld [vmem:[#allocation5 + $0xbe0] sm:$0xff]  ;;  %v446_v40 = vld [vmem:[#allocation5 + $0xbc8] sm:$0xff] }
  0xd9   :  { %3327 = vmatprep.subr.bf16.mxu0 %v4863_v41  ;;  %3531 = vmatprep.subr.bf16.mxu1 %v4865_v43  ;;  %v450_v41 = vld [vmem:[#allocation5 + $0xbe8] sm:$0xff]  ;;  %v4910_v43 = vcombine.low %v437_v26, %v441_v27  ;;  %v4919_v34 = vcombine.high %v445_v38, %v449_v39  ;;  %v489_v26 = vld [vmem:[#allocation5 + $0xd20] sm:$0xff]  ;;  %v5555_v27 = vcombine.high %v5549_v20, %v5551_v21 }
  0xda   :  { %v4921_v45 = vcombine.high %v446_v40, %v450_v41  ;;  %v4920_v51 = vcombine.low %v446_v40, %v450_v41  ;;  %v494_v40 = vld [vmem:[#allocation5 + $0xd48] sm:$0xff] }
  0xdb   :  { %v498_v41 = vld [vmem:[#allocation5 + $0xd68] sm:$0xff] }
  0xdc   :  { %3328 = vmatpush1.bf16.msra.mxu0 %v4862_v47  ;;  %3532 = vmatpush1.bf16.msra.mxu1 %v4864_v48  ;;  %v457_v47 = vld [vmem:[#allocation5 + $0xc20] sm:$0xff]  ;;  %v454_v48 = vld [vmem:[#allocation5 + $0xc08] sm:$0xff] }
  0xdd   :  { %3329 = vmatprep.subr.bf16.mxu0 %v4871_v49  ;;  %3533 = vmatprep.subr.bf16.mxu1 %v4873_v50  ;;  %v458_v49 = vld [vmem:[#allocation5 + $0xc28] sm:$0xff]  ;;  %v4918_v50 = vcombine.low %v445_v38, %v449_v39  ;;  %v4927_v57 = vcombine.high %v453_v46, %v457_v47  ;;  %v4926_v3 = vcombine.low %v453_v46, %v457_v47  ;;  %v493_v38 = vld [vmem:[#allocation5 + $0xd40] sm:$0xff] }
  0xde   :  { %v4929_v59 = vcombine.high %v454_v48, %v458_v49  ;;  %v4928_v4 = vcombine.low %v454_v48, %v458_v49  ;;  %v497_v39 = vld [vmem:[#allocation5 + $0xd60] sm:$0xff]  ;;  %v502_v48 = vld [vmem:[#allocation5 + $0xd88] sm:$0xff] }
  0xdf   :  { %v501_v46 = vld [vmem:[#allocation5 + $0xd80] sm:$0xff]  ;;  %v506_v49 = vld [vmem:[#allocation5 + $0xda8] sm:$0xff] }
  0xe0   :  { %3330 = vmatpush1.bf16.msra.mxu0 %v4870_v61  ;;  %3534 = vmatpush1.bf16.msra.mxu1 %v4872_v62  ;;  %v465_v61 = vld [vmem:[#allocation5 + $0xc60] sm:$0xff]  ;;  %v5539_v62 = vcombine.low %v5525_v55, %v5527_v56  ;;  %v474_v55 = vld [vmem:[#allocation5 + $0xca8] sm:$0xff] }
  0xe1   :  { %3331 = vmatprep.subr.bf16.mxu0 %v4879_v63  ;;  %3535 = vmatprep.subr.bf16.mxu1 %v4881_v1  ;;  %v462_v63 = vld [vmem:[#allocation5 + $0xc48] sm:$0xff]  ;;  %v4935_v5 = vcombine.high %v461_v60, %v465_v61  ;;  %v4934_v56 = vcombine.low %v461_v60, %v465_v61  ;;  %v4945_v13 = vcombine.high %v470_v10, %v474_v55  ;;  %v505_v47 = vld [vmem:[#allocation5 + $0xda0] sm:$0xff] }
  0xe2   :  { %v466_v1 = vld [vmem:[#allocation5 + $0xc68] sm:$0xff]  ;;  %v509_v60 = vld [vmem:[#allocation5 + $0xdc0] sm:$0xff] }
  0xe3   :  { %v4936_v11 = vcombine.low %v462_v63, %v466_v1  ;;  %v513_v61 = vld [vmem:[#allocation5 + $0xde0] sm:$0xff] }
  0xe4   :  { %3332 = vmatpush1.bf16.msra.mxu0 %v4878_v6  ;;  %3536 = vmatpush1.bf16.msra.mxu1 %v4880_v7  ;;  %v4937_v6 = vcombine.high %v462_v63, %v466_v1  ;;  %v469_v7 = vld [vmem:[#allocation5 + $0xc80] sm:$0xff]  ;;  %v510_v63 = vld [vmem:[#allocation5 + $0xdc8] sm:$0xff] }
  0xe5   :  { %3333 = vmatprep.subr.bf16.mxu0 %v4887_v8  ;;  %3537 = vmatprep.subr.bf16.mxu1 %v4889_v9  ;;  %v473_v8 = vld [vmem:[#allocation5 + $0xca0] sm:$0xff]  ;;  %v5541_v9 = vcombine.high %v67_v2, %v67_v2  ;;  %v514_v1 = vld [vmem:[#allocation5 + $0xde8] sm:$0xff]  ;;  %v4974_v2 = vcombine.low %v501_v46, %v505_v47 }
  0xe6   :  { %v4943_v12 = vcombine.high %v469_v7, %v473_v8  ;;  %v4942_v22 = vcombine.low %v469_v7, %v473_v8  ;;  %v521_v7 = vld [vmem:[#allocation5 + $0xe20] sm:$0xff]  ;;  %v518_v8 = vld [vmem:[#allocation5 + $0xe08] sm:$0xff] }
  0xe8   :  { %3334 = vmatpush1.bf16.msra.mxu0 %v4886_v15  ;;  %3538 = vmatpush1.bf16.msra.mxu1 %v4888_v16  ;;  %v477_v15 = vld [vmem:[#allocation5 + $0xcc0] sm:$0xff] }
  0xe9   :  { %3335 = vmatprep.subr.bf16.mxu0 %v4895_v17  ;;  %3539 = vmatprep.subr.bf16.mxu1 %v4897_v18  ;;  %v481_v16 = vld [vmem:[#allocation5 + $0xce0] sm:$0xff]  ;;  %v478_v17 = vld [vmem:[#allocation5 + $0xcc8] sm:$0xff] }
  0xea   :  { %v482_v18 = vld [vmem:[#allocation5 + $0xce8] sm:$0xff] }
  0xec   :  { %3336 = vmatpush1.bf16.msra.mxu0 %v4894_v23  ;;  %3540 = vmatpush1.bf16.msra.mxu1 %v4896_v25  ;;  %v4944_v23 = vcombine.low %v470_v10, %v474_v55  ;;  %v4951_v25 = vcombine.high %v477_v15, %v481_v16  ;;  %v522_v10 = vld [vmem:[#allocation5 + $0xe28] sm:$0xff]  ;;  %v4982_v55 = vcombine.low %v509_v60, %v513_v61 }
  0xed   :  { %3337 = vmatprep.subr.bf16.mxu0 %v4903_v53  ;;  %3541 = vmatprep.subr.bf16.mxu1 %v4905_v54  ;;  %v4953_v53 = vcombine.high %v478_v17, %v482_v18  ;;  %v485_v54 = vld [vmem:[#allocation5 + $0xd00] sm:$0xff] }
  0xf0   :  { %3338 = vmatpush1.bf16.msra.mxu0 %v4902_v31  ;;  %3542 = vmatpush1.bf16.msra.mxu1 %v4904_v33  ;;  %v4950_v31 = vcombine.low %v477_v15, %v481_v16  ;;  %v4952_v33 = vcombine.low %v478_v17, %v482_v18  ;;  %v529_v15 = vld [vmem:[#allocation5 + $0xe60] sm:$0xff]  ;;  %v526_v16 = vld [vmem:[#allocation5 + $0xe48] sm:$0xff] }
  0xf1   :  { %3339 = vmatprep.subr.bf16.mxu0 %v4911_v36  ;;  %3543 = vmatprep.subr.bf16.mxu1 %v4913_v37  ;;  %v4959_v36 = vcombine.high %v485_v54, %v489_v26  ;;  %v4961_v37 = vcombine.high %v486_v28, %v490_v30  ;;  %v530_v17 = vld [vmem:[#allocation5 + $0xe68] sm:$0xff] }
  0xf4   :  { %3340 = vmatpush1.bf16.msra.mxu0 %v4910_v43  ;;  %3544 = vmatpush1.bf16.msra.mxu1 %v4912_v32  ;;  %v4958_v43 = vcombine.low %v485_v54, %v489_v26  ;;  %v4960_v32 = vcombine.low %v486_v28, %v490_v30  ;;  %v537_v54 = vld [vmem:[#allocation5 + $0xea0] sm:$0xff]  ;;  %v534_v26 = vld [vmem:[#allocation5 + $0xe88] sm:$0xff] }
  0xf5   :  { %3341 = vmatprep.subr.bf16.mxu0 %v4919_v34  ;;  %3545 = vmatprep.subr.bf16.mxu1 %v4921_v45  ;;  %v4967_v34 = vcombine.high %v493_v38, %v497_v39  ;;  %v4969_v45 = vcombine.high %v494_v40, %v498_v41  ;;  %v538_v28 = vld [vmem:[#allocation5 + $0xea8] sm:$0xff] }
  0xf8   :  { %3342 = vmatpush1.bf16.msra.mxu0 %v4918_v50  ;;  %3546 = vmatpush1.bf16.msra.mxu1 %v4920_v51  ;;  %v4966_v50 = vcombine.low %v493_v38, %v497_v39  ;;  %v4968_v51 = vcombine.low %v494_v40, %v498_v41  ;;  %v545_v38 = vld [vmem:[#allocation5 + $0xee0] sm:$0xff]  ;;  %v542_v39 = vld [vmem:[#allocation5 + $0xec8] sm:$0xff] }
  0xf9   :  { %3362 = vmatprep.subr.bf16.mxu0 %v4927_v57  ;;  %3566 = vmatprep.subr.bf16.mxu1 %v4929_v59  ;;  %v4975_v57 = vcombine.high %v501_v46, %v505_v47  ;;  %v4977_v59 = vcombine.high %v502_v48, %v506_v49  ;;  %v546_v40 = vld [vmem:[#allocation5 + $0xee8] sm:$0xff]  ;;  %v553_v46 = vld [vmem:[#allocation5 + $0xf20] sm:$0xff] }
  0xfa   :  { %v550_v47 = vld [vmem:[#allocation5 + $0xf08] sm:$0xff] }
  0xfb   :  { %3344 = vmatmul.mubr.bf16.vlgmr.msra.gmra.mrb[0].mxu0 %v5539_v62  ;;  %3548 = vmatmul.mubr.bf16.vlgmr.msra.gmra.mrb[0].mxu1 %v5539_v62 }
  0xfc   :  { %3363 = vmatpush1.bf16.msra.mxu0 %v4926_v3  ;;  %3567 = vmatpush1.bf16.msra.mxu1 %v4928_v4  ;;  %v4976_v3 = vcombine.low %v502_v48, %v506_v49  ;;  %v4983_v4 = vcombine.high %v509_v60, %v513_v61  ;;  %v554_v48 = vld [vmem:[#allocation5 + $0xf28] sm:$0xff]  ;;  %v561_v60 = vld [vmem:[#allocation5 + $0xf60] sm:$0xff] }
  0xfd   :  { %3364 = vmatprep.subr.bf16.mxu0 %v4935_v5  ;;  %3568 = vmatprep.subr.bf16.mxu1 %v4937_v6  ;;  %v4985_v5 = vcombine.high %v510_v63, %v514_v1  ;;  %v517_v6 = vld [vmem:[#allocation5 + $0xe00] sm:$0xff]  ;;  %v558_v61 = vld [vmem:[#allocation5 + $0xf48] sm:$0xff] }
  0xfe   :  { %3353 = vmatprep.mubr.bf16.mxu0 %v5541_v9  ;;  %3557 = vmatprep.mubr.bf16.mxu1 %v5541_v9  ;;  %v4990_v18 = vcombine.low %v517_v6, %v521_v7 }
 0x100   :  { %3365 = vmatpush1.bf16.msra.mxu0 %v4934_v56  ;;  %3569 = vmatpush1.bf16.msra.mxu1 %v4936_v11  ;;  %v4984_v56 = vcombine.low %v510_v63, %v514_v1  ;;  %v4991_v11 = vcombine.high %v517_v6, %v521_v7  ;;  %v562_v63 = vld [vmem:[#allocation5 + $0xf68] sm:$0xff]  ;;  %v569_v6 = vld [vmem:[#allocation5 + $0xfa0] sm:$0xff] }
 0x101   :  { %3366 = vmatprep.subr.bf16.mxu0 %v4943_v12  ;;  %3570 = vmatprep.subr.bf16.mxu1 %v4945_v13  ;;  %v4993_v12 = vcombine.high %v518_v8, %v522_v10  ;;  %v525_v13 = vld [vmem:[#allocation5 + $0xe40] sm:$0xff]  ;;  %v566_v7 = vld [vmem:[#allocation5 + $0xf88] sm:$0xff] }
 0x102   :  { %v4998_v30 = vcombine.low %v525_v13, %v529_v15 }
 0x103   :  { %3354 = vmatmul.mubr.bf16.gmra.mrb[4].mxu0 %v5547_v19  ;;  %3558 = vmatmul.mubr.bf16.gmra.mrb[4].mxu1 %v5547_v19 }
 0x104   :  { %3367 = vmatpush1.bf16.msra.mxu0 %v4942_v22  ;;  %3571 = vmatpush1.bf16.msra.mxu1 %v4944_v23  ;;  %v4992_v22 = vcombine.low %v518_v8, %v522_v10  ;;  %v4999_v23 = vcombine.high %v525_v13, %v529_v15  ;;  %v570_v8 = vld [vmem:[#allocation5 + $0xfa8] sm:$0xff]  ;;  %v577_v13 = vld [vmem:[#allocation5 + $0xfe0] sm:$0xff] }
 0x105   :  { %3368 = vmatprep.subr.bf16.mxu0 %v4951_v25  ;;  %3572 = vmatprep.subr.bf16.mxu1 %v4953_v53  ;;  %v5001_v25 = vcombine.high %v526_v16, %v530_v17  ;;  %v533_v53 = vld [vmem:[#allocation5 + $0xe80] sm:$0xff]  ;;  %v574_v15 = vld [vmem:[#allocation5 + $0xfc8] sm:$0xff] }
 0x106   :  { %3394 = vmatprep.mubr.bf16.mxu0 %v5555_v27  ;;  %3598 = vmatprep.mubr.bf16.mxu1 %v5555_v27  ;;  %v5006_v41 = vcombine.low %v533_v53, %v537_v54 }
 0x108   :  { %3369 = vmatpush1.bf16.msra.mxu0 %v4950_v31  ;;  %3573 = vmatpush1.bf16.msra.mxu1 %v4952_v33  ;;  %v5000_v31 = vcombine.low %v526_v16, %v530_v17  ;;  %v5007_v33 = vcombine.high %v533_v53, %v537_v54  ;;  %v578_v16 = vld [vmem:[#allocation5 + $0xfe8] sm:$0xff]  ;;  %v75_v53 = vld [vmem:[#allocation5 + $0x30] sm:$0xff]  ;;  %v72_v54 = vld [vmem:[#allocation5 + $0x18] sm:$0xff] }
 0x109   :  { %3370 = vmatprep.subr.bf16.mxu0 %v4959_v36  ;;  %3574 = vmatprep.subr.bf16.mxu1 %v4961_v37  ;;  %v5009_v36 = vcombine.high %v534_v26, %v538_v28  ;;  %v541_v37 = vld [vmem:[#allocation5 + $0xec0] sm:$0xff] }
 0x10a   :  { %v5014_v49 = vcombine.low %v541_v37, %v545_v38 }
 0x10c   :  { %3371 = vmatpush1.bf16.msra.mxu0 %v4958_v43  ;;  %3575 = vmatpush1.bf16.msra.mxu1 %v4960_v32  ;;  %v5008_v43 = vcombine.low %v534_v26, %v538_v28  ;;  %v5015_v32 = vcombine.high %v541_v37, %v545_v38  ;;  %v76_v26 = vld [vmem:[#allocation5 + $0x38] sm:$0xff]  ;;  %v83_v37 = vld [vmem:[#allocation5 + $0x70] sm:$0xff]  ;;  %v5563_v38 = vcombine.low %v5549_v20, %v5551_v21 }
 0x10d   :  { %3372 = vmatprep.subr.bf16.mxu0 %v4967_v34  ;;  %3576 = vmatprep.subr.bf16.mxu1 %v4969_v45  ;;  %v5017_v34 = vcombine.high %v542_v39, %v546_v40  ;;  %v549_v45 = vld [vmem:[#allocation5 + $0xf00] sm:$0xff]  ;;  %v92_v20 = vld [vmem:[#allocation5 + $0xb8] sm:$0xff] }
 0x10e   :  { %v5022_v1 = vcombine.low %v549_v45, %v553_v46 }
 0x110   :  { %3373 = vmatpush1.bf16.msra.mxu0 %v4966_v50  ;;  %3577 = vmatpush1.bf16.msra.mxu1 %v4968_v51  ;;  %v5016_v50 = vcombine.low %v542_v39, %v546_v40  ;;  %v5023_v51 = vcombine.high %v549_v45, %v553_v46  ;;  %v80_v39 = vld [vmem:[#allocation5 + $0x58] sm:$0xff] }
 0x111   :  { %3374 = vmatprep.subr.bf16.mxu0 %v4975_v57  ;;  %3578 = vmatprep.subr.bf16.mxu1 %v4977_v59  ;;  %v5025_v57 = vcombine.high %v550_v47, %v554_v48  ;;  %v557_v59 = vld [vmem:[#allocation5 + $0xf40] sm:$0xff]  ;;  %v84_v40 = vld [vmem:[#allocation5 + $0x78] sm:$0xff] }
 0x112   :  { %v5030_v10 = vcombine.low %v557_v59, %v561_v60  ;;  %v4557_v45 = vcombine.high %v80_v39, %v84_v40 }
 0x114   :  { %3375 = vmatpush1.bf16.msra.mxu0 %v4974_v2  ;;  %3579 = vmatpush1.bf16.msra.mxu1 %v4976_v3  ;;  %v5024_v2 = vcombine.low %v550_v47, %v554_v48  ;;  %v5031_v3 = vcombine.high %v557_v59, %v561_v60  ;;  %v87_v47 = vld [vmem:[#allocation5 + $0x90] sm:$0xff] }
 0x115   :  { %3376 = vmatprep.subr.bf16.mxu0 %v4983_v4  ;;  %3580 = vmatprep.subr.bf16.mxu1 %v4985_v5  ;;  %v5033_v4 = vcombine.high %v558_v61, %v562_v63  ;;  %v565_v5 = vld [vmem:[#allocation5 + $0xf80] sm:$0xff]  ;;  %v91_v48 = vld [vmem:[#allocation5 + $0xb0] sm:$0xff] }
 0x116   :  { %v5038_v17 = vcombine.low %v565_v5, %v569_v6  ;;  %v95_v59 = vld [vmem:[#allocation5 + $0xd0] sm:$0xff] }
 0x117   :  { %v99_v60 = vld [vmem:[#allocation5 + $0xf0] sm:$0xff] }
 0x118   :  { %3377 = vmatpush1.bf16.msra.mxu0 %v4982_v55  ;;  %3581 = vmatpush1.bf16.msra.mxu1 %v4984_v56  ;;  %v5032_v55 = vcombine.low %v558_v61, %v562_v63  ;;  %v5039_v56 = vcombine.high %v565_v5, %v569_v6  ;;  %v96_v63 = vld [vmem:[#allocation5 + $0xd8] sm:$0xff]  ;;  %v103_v6 = vld [vmem:[#allocation5 + $0x110] sm:$0xff] }
 0x119   :  { %3378 = vmatprep.subr.bf16.mxu0 %v4991_v11  ;;  %3582 = vmatprep.subr.bf16.mxu1 %v4993_v12  ;;  %v5041_v11 = vcombine.high %v566_v7, %v570_v8  ;;  %v573_v12 = vld [vmem:[#allocation5 + $0xfc0] sm:$0xff] }
 0x11a   :  { %v5046_v28 = vcombine.low %v573_v12, %v577_v13 }
 0x11c   :  { %3379 = vmatpush1.bf16.msra.mxu0 %v4990_v18  ;;  %3583 = vmatpush1.bf16.msra.mxu1 %v4992_v22  ;;  %v5040_v18 = vcombine.low %v566_v7, %v570_v8  ;;  %v5047_v22 = vcombine.high %v573_v12, %v577_v13  ;;  %v107_v7 = vld [vmem:[#allocation5 + $0x130] sm:$0xff]  ;;  %v104_v8 = vld [vmem:[#allocation5 + $0x118] sm:$0xff] }
 0x11d   :  { %3380 = vmatprep.subr.bf16.mxu0 %v4999_v23  ;;  %3584 = vmatprep.subr.bf16.mxu1 %v5001_v25  ;;  %v5049_v23 = vcombine.high %v574_v15, %v578_v16  ;;  %v71_v25 = vld [vmem:[#allocation5 + $0x10] sm:$0xff] }
 0x11e   :  { %v111_v13 = vld [vmem:[#allocation5 + $0x150] sm:$0xff] }
 0x120   :  { %3381 = vmatpush1.bf16.msra.mxu0 %v4998_v30  ;;  %3585 = vmatpush1.bf16.msra.mxu1 %v5000_v31  ;;  %v5048_v30 = vcombine.low %v574_v15, %v578_v16  ;;  %v4547_v31 = vcombine.high %v71_v25, %v75_v53  ;;  %v115_v15 = vld [vmem:[#allocation5 + $0x170] sm:$0xff]  ;;  %v112_v16 = vld [vmem:[#allocation5 + $0x158] sm:$0xff] }
 0x121   :  { %3382 = vmatprep.subr.bf16.mxu0 %v5007_v33  ;;  %3586 = vmatprep.subr.bf16.mxu1 %v5009_v36  ;;  %v4549_v33 = vcombine.high %v72_v54, %v76_v26  ;;  %v79_v36 = vld [vmem:[#allocation5 + $0x50] sm:$0xff] }
 0x122   :  { %v4554_v21 = vcombine.low %v79_v36, %v83_v37 }
 0x124   :  { %3383 = vmatpush1.bf16.msra.mxu0 %v5006_v41  ;;  %3587 = vmatpush1.bf16.msra.mxu1 %v5008_v43  ;;  %v68_v41 = vld [vmem:[#allocation2 + $0x58] sm:$0xff]  ;;  %v4546_v43 = vcombine.low %v71_v25, %v75_v53  ;;  %v119_v53 = vld [vmem:[#allocation5 + $0x190] sm:$0xff] }
 0x125   :  { %3384 = vmatprep.subr.bf16.mxu0 %v5015_v32  ;;  %3588 = vmatprep.subr.bf16.mxu1 %v5017_v34  ;;  %v4548_v32 = vcombine.low %v72_v54, %v76_v26  ;;  %v4555_v34 = vcombine.high %v79_v36, %v83_v37  ;;  %v5565_v46 = vcombine.high %v68_v41, %v68_v41  ;;  %v123_v54 = vld [vmem:[#allocation5 + $0x1b0] sm:$0xff]  ;;  %v120_v26 = vld [vmem:[#allocation5 + $0x198] sm:$0xff] }
 0x126   :  { %v5571_v61 = vcombine.low %v68_v41, %v68_v41  ;;  %v127_v36 = vld [vmem:[#allocation5 + $0x1d0] sm:$0xff]  ;;  %v4594_v41 = vcombine.low %v119_v53, %v123_v54 }
 0x127   :  { %v131_v37 = vld [vmem:[#allocation5 + $0x1f0] sm:$0xff] }
 0x128   :  { %3385 = vmatpush1.bf16.msra.mxu0 %v5014_v49  ;;  %3589 = vmatpush1.bf16.msra.mxu1 %v5016_v50  ;;  %v88_v49 = vld [vmem:[#allocation5 + $0x98] sm:$0xff]  ;;  %v4556_v50 = vcombine.low %v80_v39, %v84_v40 }
 0x129   :  { %3386 = vmatprep.subr.bf16.mxu0 %v5023_v51  ;;  %3590 = vmatprep.subr.bf16.mxu1 %v5025_v57  ;;  %v4563_v51 = vcombine.high %v87_v47, %v91_v48  ;;  %v4565_v57 = vcombine.high %v88_v49, %v92_v20  ;;  %v128_v39 = vld [vmem:[#allocation5 + $0x1d8] sm:$0xff] }
 0x12a   :  { %v132_v40 = vld [vmem:[#allocation5 + $0x1f8] sm:$0xff] }
 0x12c   :  { %3387 = vmatpush1.bf16.msra.mxu0 %v5022_v1  ;;  %3591 = vmatpush1.bf16.msra.mxu1 %v5024_v2  ;;  %v100_v1 = vld [vmem:[#allocation5 + $0xf8] sm:$0xff]  ;;  %v4562_v2 = vcombine.low %v87_v47, %v91_v48  ;;  %v139_v47 = vld [vmem:[#allocation5 + $0x230] sm:$0xff] }
 0x12d   :  { %3388 = vmatprep.subr.bf16.mxu0 %v5031_v3  ;;  %3592 = vmatprep.subr.bf16.mxu1 %v5033_v4  ;;  %v4564_v3 = vcombine.low %v88_v49, %v92_v20  ;;  %v4571_v4 = vcombine.high %v95_v59, %v99_v60  ;;  %v4573_v5 = vcombine.high %v96_v63, %v100_v1  ;;  %v136_v48 = vld [vmem:[#allocation5 + $0x218] sm:$0xff] }
 0x12e   :  { %v140_v49 = vld [vmem:[#allocation5 + $0x238] sm:$0xff]  ;;  %v4602_v20 = vcombine.low %v127_v36, %v131_v37 }
 0x130   :  { %3389 = vmatpush1.bf16.msra.mxu0 %v5030_v10  ;;  %3593 = vmatpush1.bf16.msra.mxu1 %v5032_v55  ;;  %v108_v10 = vld [vmem:[#allocation5 + $0x138] sm:$0xff]  ;;  %v4570_v55 = vcombine.low %v95_v59, %v99_v60  ;;  %v147_v59 = vld [vmem:[#allocation5 + $0x270] sm:$0xff] }
 0x131   :  { %3390 = vmatprep.subr.bf16.mxu0 %v5039_v56  ;;  %3594 = vmatprep.subr.bf16.mxu1 %v5041_v11  ;;  %v4572_v56 = vcombine.low %v96_v63, %v100_v1  ;;  %v4579_v11 = vcombine.high %v103_v6, %v107_v7  ;;  %v4581_v12 = vcombine.high %v104_v8, %v108_v10  ;;  %v144_v60 = vld [vmem:[#allocation5 + $0x258] sm:$0xff] }
 0x132   :  { %v148_v63 = vld [vmem:[#allocation5 + $0x278] sm:$0xff] }
 0x134   :  { %3391 = vmatpush1.bf16.msra.mxu0 %v5038_v17  ;;  %3595 = vmatpush1.bf16.msra.mxu1 %v5040_v18  ;;  %v116_v17 = vld [vmem:[#allocation5 + $0x178] sm:$0xff]  ;;  %v4578_v18 = vcombine.low %v103_v6, %v107_v7  ;;  %v155_v6 = vld [vmem:[#allocation5 + $0x2b0] sm:$0xff] }
 0x135   :  { %3392 = vmatprep.subr.bf16.mxu0 %v5047_v22  ;;  %3596 = vmatprep.subr.bf16.mxu1 %v5049_v23  ;;  %v4580_v22 = vcombine.low %v104_v8, %v108_v10  ;;  %v4587_v23 = vcombine.high %v111_v13, %v115_v15  ;;  %v4589_v25 = vcombine.high %v112_v16, %v116_v17  ;;  %v152_v7 = vld [vmem:[#allocation5 + $0x298] sm:$0xff] }
 0x136   :  { %v156_v8 = vld [vmem:[#allocation5 + $0x2b8] sm:$0xff] }
 0x138   :  { %3393 = vmatpush1.bf16.msra.mxu0 %v5046_v28  ;;  %3597 = vmatpush1.bf16.msra.mxu1 %v5048_v30  ;;  %v124_v28 = vld [vmem:[#allocation5 + $0x1b8] sm:$0xff]  ;;  %v4586_v30 = vcombine.low %v111_v13, %v115_v15  ;;  %v163_v13 = vld [vmem:[#allocation5 + $0x2f0] sm:$0xff] }
 0x139   :  { %3617 = vmatprep.subr.bf16.mxu0 %v4547_v31  ;;  %3821 = vmatprep.subr.bf16.mxu1 %v4549_v33  ;;  %v4588_v31 = vcombine.low %v112_v16, %v116_v17  ;;  %v4595_v33 = vcombine.high %v119_v53, %v123_v54  ;;  %v160_v15 = vld [vmem:[#allocation5 + $0x2d8] sm:$0xff]  ;;  %v171_v53 = vld [vmem:[#allocation5 + $0x330] sm:$0xff] }
 0x13a   :  { %v164_v16 = vld [vmem:[#allocation5 + $0x2f8] sm:$0xff] }
 0x13b   :  { %3395 = vmatmul.mubr.bf16.vlgmr.msra.gmra.mrb[0].mxu0 %v5563_v38  ;;  %3599 = vmatmul.mubr.bf16.vlgmr.msra.gmra.mrb[0].mxu1 %v5563_v38  ;;  %v168_v54 = vld [vmem:[#allocation5 + $0x318] sm:$0xff] }
 0x13c   :  { %3618 = vmatpush1.bf16.msra.mxu0 %v4546_v43  ;;  %3822 = vmatpush1.bf16.msra.mxu1 %v4548_v32  ;;  %v4596_v43 = vcombine.low %v120_v26, %v124_v28  ;;  %v4603_v32 = vcombine.high %v127_v36, %v131_v37  ;;  %v179_v36 = vld [vmem:[#allocation5 + $0x370] sm:$0xff]  ;;  %v176_v37 = vld [vmem:[#allocation5 + $0x358] sm:$0xff] }
 0x13d   :  { %3619 = vmatprep.subr.bf16.mxu0 %v4555_v34  ;;  %3823 = vmatprep.subr.bf16.mxu1 %v4557_v45  ;;  %v4605_v34 = vcombine.high %v128_v39, %v132_v40  ;;  %v135_v45 = vld [vmem:[#allocation5 + $0x210] sm:$0xff] }
 0x13e   :  { %3404 = vmatprep.mubr.bf16.mxu0 %v5565_v46  ;;  %3608 = vmatprep.mubr.bf16.mxu1 %v5565_v46  ;;  %v4610_v1 = vcombine.low %v135_v45, %v139_v47 }
 0x140   :  { %3620 = vmatpush1.bf16.msra.mxu0 %v4554_v21  ;;  %3824 = vmatpush1.bf16.msra.mxu1 %v4556_v50  ;;  %v4604_v21 = vcombine.low %v128_v39, %v132_v40  ;;  %v4611_v50 = vcombine.high %v135_v45, %v139_v47  ;;  %v180_v39 = vld [vmem:[#allocation5 + $0x378] sm:$0xff]  ;;  %v187_v45 = vld [vmem:[#allocation5 + $0x3b0] sm:$0xff] }
 0x141   :  { %3621 = vmatprep.subr.bf16.mxu0 %v4563_v51  ;;  %3825 = vmatprep.subr.bf16.mxu1 %v4565_v57  ;;  %v4613_v51 = vcombine.high %v136_v48, %v140_v49  ;;  %v143_v57 = vld [vmem:[#allocation5 + $0x250] sm:$0xff]  ;;  %v184_v47 = vld [vmem:[#allocation5 + $0x398] sm:$0xff] }
 0x142   :  { %v4618_v10 = vcombine.low %v143_v57, %v147_v59 }
 0x143   :  { %3405 = vmatmul.mubr.bf16.gmra.mrb[4].mxu0 %v5571_v61  ;;  %3609 = vmatmul.mubr.bf16.gmra.mrb[4].mxu1 %v5571_v61 }
 0x144   :  { %3622 = vmatpush1.bf16.msra.mxu0 %v4562_v2  ;;  %3826 = vmatpush1.bf16.msra.mxu1 %v4564_v3  ;;  %v4612_v2 = vcombine.low %v136_v48, %v140_v49  ;;  %v4619_v3 = vcombine.high %v143_v57, %v147_v59  ;;  %v188_v48 = vld [vmem:[#allocation5 + $0x3b8] sm:$0xff]  ;;  %v195_v57 = vld [vmem:[#allocation5 + $0x3f0] sm:$0xff] }
 0x145   :  { %3623 = vmatprep.subr.bf16.mxu0 %v4571_v4  ;;  %3827 = vmatprep.subr.bf16.mxu1 %v4573_v5  ;;  %v4621_v4 = vcombine.high %v144_v60, %v148_v63  ;;  %v151_v5 = vld [vmem:[#allocation5 + $0x290] sm:$0xff]  ;;  %v192_v59 = vld [vmem:[#allocation5 + $0x3d8] sm:$0xff] }
 0x146   :  { %3649 = vmatprep.mubr.bf16.mxu0 %v5485_v58  ;;  %3853 = vmatprep.mubr.bf16.mxu1 %v5485_v58  ;;  %v4597_v58 = vcombine.high %v120_v26, %v124_v28  ;;  %v4626_v17 = vcombine.low %v151_v5, %v155_v6  ;;  %v172_v26 = vld [vmem:[#allocation5 + $0x338] sm:$0xff] }
 0x148   :  { %3624 = vmatpush1.bf16.msra.mxu0 %v4570_v55  ;;  %3828 = vmatpush1.bf16.msra.mxu1 %v4572_v56  ;;  %v4620_v55 = vcombine.low %v144_v60, %v148_v63  ;;  %v4627_v56 = vcombine.high %v151_v5, %v155_v6  ;;  %v196_v60 = vld [vmem:[#allocation5 + $0x3f8] sm:$0xff]  ;;  %v203_v5 = vld [vmem:[#allocation5 + $0x430] sm:$0xff] }
 0x149   :  { %3625 = vmatprep.subr.bf16.mxu0 %v4579_v11  ;;  %3829 = vmatprep.subr.bf16.mxu1 %v4581_v12  ;;  %v4629_v11 = vcombine.high %v152_v7, %v156_v8  ;;  %v159_v12 = vld [vmem:[#allocation5 + $0x2d0] sm:$0xff]  ;;  %v200_v6 = vld [vmem:[#allocation5 + $0x418] sm:$0xff] }
 0x14a   :  { %v4634_v28 = vcombine.low %v159_v12, %v163_v13 }
 0x14c   :  { %3626 = vmatpush1.bf16.msra.mxu0 %v4578_v18  ;;  %3830 = vmatpush1.bf16.msra.mxu1 %v4580_v22  ;;  %v4628_v18 = vcombine.low %v152_v7, %v156_v8  ;;  %v4635_v22 = vcombine.high %v159_v12, %v163_v13  ;;  %v204_v7 = vld [vmem:[#allocation5 + $0x438] sm:$0xff]  ;;  %v211_v12 = vld [vmem:[#allocation5 + $0x470] sm:$0xff] }
 0x14d   :  { %3627 = vmatprep.subr.bf16.mxu0 %v4587_v23  ;;  %3831 = vmatprep.subr.bf16.mxu1 %v4589_v25  ;;  %v4637_v23 = vcombine.high %v160_v15, %v164_v16  ;;  %v167_v25 = vld [vmem:[#allocation5 + $0x310] sm:$0xff]  ;;  %v208_v13 = vld [vmem:[#allocation5 + $0x458] sm:$0xff] }
 0x14e   :  { %v4642_v40 = vcombine.low %v167_v25, %v171_v53 }
 0x150   :  { %3628 = vmatpush1.bf16.msra.mxu0 %v4586_v30  ;;  %3832 = vmatpush1.bf16.msra.mxu1 %v4588_v31  ;;  %v4636_v30 = vcombine.low %v160_v15, %v164_v16  ;;  %v4643_v31 = vcombine.high %v167_v25, %v171_v53  ;;  %v212_v15 = vld [vmem:[#allocation5 + $0x478] sm:$0xff]  ;;  %v219_v25 = vld [vmem:[#allocation5 + $0x4b0] sm:$0xff] }
 0x151   :  { %3629 = vmatprep.subr.bf16.mxu0 %v4595_v33  ;;  %3833 = vmatprep.subr.bf16.mxu1 %v4597_v58  ;;  %v4645_v33 = vcombine.high %v168_v54, %v172_v26  ;;  %v175_v58 = vld [vmem:[#allocation5 + $0x350] sm:$0xff]  ;;  %v216_v53 = vld [vmem:[#allocation5 + $0x498] sm:$0xff] }
 0x152   :  { %v4650_v49 = vcombine.low %v175_v58, %v179_v36 }
 0x154   :  { %3630 = vmatpush1.bf16.msra.mxu0 %v4594_v41  ;;  %3834 = vmatpush1.bf16.msra.mxu1 %v4596_v43  ;;  %v4644_v41 = vcombine.low %v168_v54, %v172_v26  ;;  %v4651_v43 = vcombine.high %v175_v58, %v179_v36  ;;  %v220_v54 = vld [vmem:[#allocation5 + $0x4b8] sm:$0xff]  ;;  %v227_v58 = vld [vmem:[#allocation5 + $0x4f0] sm:$0xff] }
 0x155   :  { %3631 = vmatprep.subr.bf16.mxu0 %v4603_v32  ;;  %3835 = vmatprep.subr.bf16.mxu1 %v4605_v34  ;;  %v4653_v32 = vcombine.high %v176_v37, %v180_v39  ;;  %v183_v34 = vld [vmem:[#allocation5 + $0x390] sm:$0xff]  ;;  %v224_v36 = vld [vmem:[#allocation5 + $0x4d8] sm:$0xff] }
 0x156   :  { %v4658_v63 = vcombine.low %v183_v34, %v187_v45 }
 0x158   :  { %3632 = vmatpush1.bf16.msra.mxu0 %v4602_v20  ;;  %3836 = vmatpush1.bf16.msra.mxu1 %v4604_v21  ;;  %v4652_v20 = vcombine.low %v176_v37, %v180_v39  ;;  %v4659_v21 = vcombine.high %v183_v34, %v187_v45  ;;  %v228_v37 = vld [vmem:[#allocation5 + $0x4f8] sm:$0xff] }
 0x159   :  { %3633 = vmatprep.subr.bf16.mxu0 %v4611_v50  ;;  %3837 = vmatprep.subr.bf16.mxu1 %v4613_v51  ;;  %v4661_v50 = vcombine.high %v184_v47, %v188_v48  ;;  %v191_v51 = vld [vmem:[#allocation5 + $0x3d0] sm:$0xff]  ;;  %v232_v34 = vld [vmem:[#allocation5 + $0x518] sm:$0xff] }
 0x15a   :  { %v4666_v8 = vcombine.low %v191_v51, %v195_v57  ;;  %v236_v45 = vld [vmem:[#allocation5 + $0x538] sm:$0xff] }
 0x15c   :  { %3634 = vmatpush1.bf16.msra.mxu0 %v4610_v1  ;;  %3838 = vmatpush1.bf16.msra.mxu1 %v4612_v2  ;;  %v4660_v1 = vcombine.low %v184_v47, %v188_v48  ;;  %v4667_v2 = vcombine.high %v191_v51, %v195_v57  ;;  %v244_v51 = vld [vmem:[#allocation5 + $0x578] sm:$0xff] }
 0x15d   :  { %3635 = vmatprep.subr.bf16.mxu0 %v4619_v3  ;;  %3839 = vmatprep.subr.bf16.mxu1 %v4621_v4  ;;  %v4669_v3 = vcombine.high %v192_v59, %v196_v60  ;;  %v199_v4 = vld [vmem:[#allocation5 + $0x410] sm:$0xff] }
 0x15e   :  { %v4674_v16 = vcombine.low %v199_v4, %v203_v5 }
 0x160   :  { %3636 = vmatpush1.bf16.msra.mxu0 %v4618_v10  ;;  %3840 = vmatpush1.bf16.msra.mxu1 %v4620_v55  ;;  %v4668_v10 = vcombine.low %v192_v59, %v196_v60  ;;  %v4675_v55 = vcombine.high %v199_v4, %v203_v5  ;;  %v4708_v59 = vcombine.low %v232_v34, %v236_v45 }
 0x161   :  { %3637 = vmatprep.subr.bf16.mxu0 %v4627_v56  ;;  %3841 = vmatprep.subr.bf16.mxu1 %v4629_v11  ;;  %v4677_v56 = vcombine.high %v200_v6, %v204_v7  ;;  %v207_v11 = vld [vmem:[#allocation5 + $0x450] sm:$0xff] }
 0x162   :  { %v4682_v26 = vcombine.low %v207_v11, %v211_v12 }
 0x164   :  { %3638 = vmatpush1.bf16.msra.mxu0 %v4626_v17  ;;  %3842 = vmatpush1.bf16.msra.mxu1 %v4628_v18  ;;  %v4676_v17 = vcombine.low %v200_v6, %v204_v7  ;;  %v4683_v18 = vcombine.high %v207_v11, %v211_v12  ;;  %v255_v7 = vld [vmem:[#allocation5 + $0x5d0] sm:$0xff] }
 0x165   :  { %3639 = vmatprep.subr.bf16.mxu0 %v4635_v22  ;;  %3843 = vmatprep.subr.bf16.mxu1 %v4637_v23  ;;  %v4685_v22 = vcombine.high %v208_v13, %v212_v15  ;;  %v215_v23 = vld [vmem:[#allocation5 + $0x490] sm:$0xff] }
 0x166   :  { %v4690_v39 = vcombine.low %v215_v23, %v219_v25 }
 0x168   :  { %3640 = vmatpush1.bf16.msra.mxu0 %v4634_v28  ;;  %3844 = vmatpush1.bf16.msra.mxu1 %v4636_v30  ;;  %v4684_v28 = vcombine.low %v208_v13, %v212_v15  ;;  %v4691_v30 = vcombine.high %v215_v23, %v219_v25  ;;  %v263_v15 = vld [vmem:[#allocation5 + $0x610] sm:$0xff] }
 0x169   :  { %3641 = vmatprep.subr.bf16.mxu0 %v4643_v31  ;;  %3845 = vmatprep.subr.bf16.mxu1 %v4645_v33  ;;  %v4693_v31 = vcombine.high %v216_v53, %v220_v54  ;;  %v223_v33 = vld [vmem:[#allocation5 + $0x4d0] sm:$0xff] }
 0x16a   :  { %v4698_v47 = vcombine.low %v223_v33, %v227_v58 }
 0x16c   :  { %3642 = vmatpush1.bf16.msra.mxu0 %v4642_v40  ;;  %3846 = vmatpush1.bf16.msra.mxu1 %v4644_v41  ;;  %v4699_v40 = vcombine.high %v223_v33, %v227_v58  ;;  %v4701_v41 = vcombine.high %v224_v36, %v228_v37 }
 0x16d   :  { %3643 = vmatprep.subr.bf16.mxu0 %v4651_v43  ;;  %3847 = vmatprep.subr.bf16.mxu1 %v4653_v32  ;;  %v231_v43 = vld [vmem:[#allocation5 + $0x510] sm:$0xff] }
 0x16e   :  { %v235_v32 = vld [vmem:[#allocation5 + $0x530] sm:$0xff] }
 0x16f   :  { %v4707_v48 = vcombine.high %v231_v43, %v235_v32  ;;  %v4706_v57 = vcombine.low %v231_v43, %v235_v32 }
 0x170   :  { %3644 = vmatpush1.bf16.msra.mxu0 %v4650_v49  ;;  %3848 = vmatpush1.bf16.msra.mxu1 %v4652_v20  ;;  %v4709_v49 = vcombine.high %v232_v34, %v236_v45  ;;  %v239_v20 = vld [vmem:[#allocation5 + $0x550] sm:$0xff] }
 0x171   :  { %3645 = vmatprep.subr.bf16.mxu0 %v4659_v21  ;;  %3849 = vmatprep.subr.bf16.mxu1 %v4661_v50  ;;  %v243_v21 = vld [vmem:[#allocation5 + $0x570] sm:$0xff]  ;;  %v240_v50 = vld [vmem:[#allocation5 + $0x558] sm:$0xff] }
 0x172   :  { %v4717_v60 = vcombine.high %v240_v50, %v244_v51  ;;  %v4714_v4 = vcombine.low %v239_v20, %v243_v21  ;;  %v4716_v5 = vcombine.low %v240_v50, %v244_v51  ;;  %v287_v45 = vld [vmem:[#allocation5 + $0x6d0] sm:$0xff] }
 0x173   :  { %v295_v51 = vld [vmem:[#allocation5 + $0x710] sm:$0xff] }
 0x174   :  { %3646 = vmatpush1.bf16.msra.mxu0 %v4658_v63  ;;  %3850 = vmatpush1.bf16.msra.mxu1 %v4660_v1  ;;  %v247_v63 = vld [vmem:[#allocation5 + $0x590] sm:$0xff] }
 0x175   :  { %3647 = vmatprep.subr.bf16.mxu0 %v4667_v2  ;;  %3851 = vmatprep.subr.bf16.mxu1 %v4669_v3  ;;  %v251_v1 = vld [vmem:[#allocation5 + $0x5b0] sm:$0xff]  ;;  %v248_v2 = vld [vmem:[#allocation5 + $0x598] sm:$0xff] }
 0x176   :  { %v252_v3 = vld [vmem:[#allocation5 + $0x5b8] sm:$0xff]  ;;  %v4723_v6 = vcombine.high %v247_v63, %v251_v1 }
 0x177   :  { %v4724_v11 = vcombine.low %v248_v2, %v252_v3 }
 0x178   :  { %3648 = vmatpush1.bf16.msra.mxu0 %v4666_v8  ;;  %3852 = vmatpush1.bf16.msra.mxu1 %v4668_v10  ;;  %v259_v8 = vld [vmem:[#allocation5 + $0x5f0] sm:$0xff]  ;;  %v256_v10 = vld [vmem:[#allocation5 + $0x5d8] sm:$0xff] }
 0x179   :  { %3668 = vmatprep.subr.bf16.mxu0 %v4675_v55  ;;  %3872 = vmatprep.subr.bf16.mxu1 %v4677_v56  ;;  %v260_v55 = vld [vmem:[#allocation5 + $0x5f8] sm:$0xff]  ;;  %v4722_v56 = vcombine.low %v247_v63, %v251_v1  ;;  %v4731_v12 = vcombine.high %v255_v7, %v259_v8 }
 0x17a   :  { %v4733_v13 = vcombine.high %v256_v10, %v260_v55  ;;  %v4732_v23 = vcombine.low %v256_v10, %v260_v55  ;;  %v311_v55 = vld [vmem:[#allocation5 + $0x790] sm:$0xff] }
 0x17b   :  { %3650 = vmatmul.mubr.bf16.vlgmr.msra.gmra.mrb[8].mxu0 %v5491_v14  ;;  %3854 = vmatmul.mubr.bf16.vlgmr.msra.gmra.mrb[8].mxu1 %v5491_v14  ;;  %v4692_v14 = vcombine.low %v216_v53, %v220_v54  ;;  %v271_v54 = vld [vmem:[#allocation5 + $0x650] sm:$0xff] }
 0x17c   :  { %3669 = vmatpush1.bf16.msra.mxu0 %v4674_v16  ;;  %3873 = vmatpush1.bf16.msra.mxu1 %v4676_v17  ;;  %v267_v16 = vld [vmem:[#allocation5 + $0x630] sm:$0xff]  ;;  %v264_v17 = vld [vmem:[#allocation5 + $0x618] sm:$0xff] }
 0x17d   :  { %3670 = vmatprep.subr.bf16.mxu0 %v4683_v18  ;;  %3874 = vmatprep.subr.bf16.mxu1 %v4685_v22  ;;  %v268_v18 = vld [vmem:[#allocation5 + $0x638] sm:$0xff]  ;;  %v4730_v22 = vcombine.low %v255_v7, %v259_v8  ;;  %v4739_v25 = vcombine.high %v263_v15, %v267_v16 }
 0x17e   :  { %3659 = vmatprep.mubr.bf16.mxu0 %v5493_v24  ;;  %3863 = vmatprep.mubr.bf16.mxu1 %v5493_v24  ;;  %v4700_v24 = vcombine.low %v224_v36, %v228_v37  ;;  %v4741_v53 = vcombine.high %v264_v17, %v268_v18  ;;  %v4740_v33 = vcombine.low %v264_v17, %v268_v18  ;;  %v279_v37 = vld [vmem:[#allocation5 + $0x690] sm:$0xff] }
 0x17f   :  { %v319_v18 = vld [vmem:[#allocation5 + $0x7d0] sm:$0xff] }
 0x180   :  { %3671 = vmatpush1.bf16.msra.mxu0 %v4682_v26  ;;  %3875 = vmatpush1.bf16.msra.mxu1 %v4684_v28  ;;  %v275_v26 = vld [vmem:[#allocation5 + $0x670] sm:$0xff]  ;;  %v272_v28 = vld [vmem:[#allocation5 + $0x658] sm:$0xff] }
 0x181   :  { %3672 = vmatprep.subr.bf16.mxu0 %v4691_v30  ;;  %3876 = vmatprep.subr.bf16.mxu1 %v4693_v31  ;;  %v276_v30 = vld [vmem:[#allocation5 + $0x678] sm:$0xff]  ;;  %v4738_v31 = vcombine.low %v263_v15, %v267_v16  ;;  %v4747_v58 = vcombine.high %v271_v54, %v275_v26 }
 0x182   :  { %v4749_v36 = vcombine.high %v272_v28, %v276_v30  ;;  %v4748_v43 = vcombine.low %v272_v28, %v276_v30  ;;  %v327_v30 = vld [vmem:[#allocation5 + $0x810] sm:$0xff] }
 0x183   :  { %3660 = vmatmul.mubr.bf16.gmra.mrb[12].mxu0 %v5503_v35  ;;  %3864 = vmatmul.mubr.bf16.gmra.mrb[12].mxu1 %v5503_v35  ;;  %v4715_v35 = vcombine.high %v239_v20, %v243_v21 }
 0x184   :  { %3673 = vmatpush1.bf16.msra.mxu0 %v4690_v39  ;;  %3877 = vmatpush1.bf16.msra.mxu1 %v4692_v14  ;;  %v283_v39 = vld [vmem:[#allocation5 + $0x6b0] sm:$0xff]  ;;  %v280_v14 = vld [vmem:[#allocation5 + $0x698] sm:$0xff] }
 0x185   :  { %3674 = vmatprep.subr.bf16.mxu0 %v4699_v40  ;;  %3878 = vmatprep.subr.bf16.mxu1 %v4701_v41  ;;  %v284_v40 = vld [vmem:[#allocation5 + $0x6b8] sm:$0xff]  ;;  %v4746_v41 = vcombine.low %v271_v54, %v275_v26  ;;  %v4755_v32 = vcombine.high %v279_v37, %v283_v39 }
 0x186   :  { %3700 = vmatprep.mubr.bf16.mxu0 %v5507_v44  ;;  %3904 = vmatprep.mubr.bf16.mxu1 %v5507_v44  ;;  %v4725_v44 = vcombine.high %v248_v2, %v252_v3  ;;  %v4757_v34 = vcombine.high %v280_v14, %v284_v40  ;;  %v4756_v20 = vcombine.low %v280_v14, %v284_v40  ;;  %v303_v3 = vld [vmem:[#allocation5 + $0x750] sm:$0xff] }
 0x187   :  { %v335_v40 = vld [vmem:[#allocation5 + $0x850] sm:$0xff] }
 0x188   :  { %3675 = vmatpush1.bf16.msra.mxu0 %v4698_v47  ;;  %3879 = vmatpush1.bf16.msra.mxu1 %v4700_v24  ;;  %v291_v47 = vld [vmem:[#allocation5 + $0x6f0] sm:$0xff]  ;;  %v288_v24 = vld [vmem:[#allocation5 + $0x6d8] sm:$0xff] }
 0x189   :  { %3676 = vmatprep.subr.bf16.mxu0 %v4707_v48  ;;  %3880 = vmatprep.subr.bf16.mxu1 %v4709_v49  ;;  %v292_v48 = vld [vmem:[#allocation5 + $0x6f8] sm:$0xff]  ;;  %v4754_v49 = vcombine.low %v279_v37, %v283_v39  ;;  %v4763_v21 = vcombine.high %v287_v45, %v291_v47 }
 0x18a   :  { %v4765_v50 = vcombine.high %v288_v24, %v292_v48  ;;  %v4764_v63 = vcombine.low %v288_v24, %v292_v48  ;;  %v343_v48 = vld [vmem:[#allocation5 + $0x890] sm:$0xff] }
 0x18c   :  { %3677 = vmatpush1.bf16.msra.mxu0 %v4706_v57  ;;  %3881 = vmatpush1.bf16.msra.mxu1 %v4708_v59  ;;  %v299_v57 = vld [vmem:[#allocation5 + $0x730] sm:$0xff]  ;;  %v296_v59 = vld [vmem:[#allocation5 + $0x718] sm:$0xff] }
 0x18d   :  { %3678 = vmatprep.subr.bf16.mxu0 %v4715_v35  ;;  %3882 = vmatprep.subr.bf16.mxu1 %v4717_v60  ;;  %v300_v35 = vld [vmem:[#allocation5 + $0x738] sm:$0xff]  ;;  %v4762_v60 = vcombine.low %v287_v45, %v291_v47  ;;  %v4771_v1 = vcombine.high %v295_v51, %v299_v57 }
 0x18e   :  { %v4773_v2 = vcombine.high %v296_v59, %v300_v35  ;;  %v4772_v7 = vcombine.low %v296_v59, %v300_v35  ;;  %v351_v35 = vld [vmem:[#allocation5 + $0x8d0] sm:$0xff] }
 0x190   :  { %3679 = vmatpush1.bf16.msra.mxu0 %v4714_v4  ;;  %3883 = vmatpush1.bf16.msra.mxu1 %v4716_v5  ;;  %v307_v4 = vld [vmem:[#allocation5 + $0x770] sm:$0xff]  ;;  %v304_v5 = vld [vmem:[#allocation5 + $0x758] sm:$0xff] }
 0x191   :  { %3680 = vmatprep.subr.bf16.mxu0 %v4723_v6  ;;  %3884 = vmatprep.subr.bf16.mxu1 %v4725_v44  ;;  %v308_v6 = vld [vmem:[#allocation5 + $0x778] sm:$0xff]  ;;  %v4770_v44 = vcombine.low %v295_v51, %v299_v57  ;;  %v4779_v8 = vcombine.high %v303_v3, %v307_v4 }
 0x192   :  { %v4781_v10 = vcombine.high %v304_v5, %v308_v6  ;;  %v4780_v15 = vcombine.low %v304_v5, %v308_v6  ;;  %v359_v5 = vld [vmem:[#allocation5 + $0x910] sm:$0xff] }
 0x193   :  { %v363_v6 = vld [vmem:[#allocation5 + $0x930] sm:$0xff] }
 0x194   :  { %3681 = vmatpush1.bf16.msra.mxu0 %v4722_v56  ;;  %3885 = vmatpush1.bf16.msra.mxu1 %v4724_v11  ;;  %v315_v56 = vld [vmem:[#allocation5 + $0x7b0] sm:$0xff]  ;;  %v312_v11 = vld [vmem:[#allocation5 + $0x798] sm:$0xff] }
 0x195   :  { %3682 = vmatprep.subr.bf16.mxu0 %v4731_v12  ;;  %3886 = vmatprep.subr.bf16.mxu1 %v4733_v13  ;;  %v316_v12 = vld [vmem:[#allocation5 + $0x7b8] sm:$0xff]  ;;  %v4778_v13 = vcombine.low %v303_v3, %v307_v4  ;;  %v4787_v16 = vcombine.high %v311_v55, %v315_v56 }
 0x196   :  { %v4789_v17 = vcombine.high %v312_v11, %v316_v12  ;;  %v4788_v54 = vcombine.low %v312_v11, %v316_v12  ;;  %v371_v11 = vld [vmem:[#allocation5 + $0x970] sm:$0xff]  ;;  %v368_v12 = vld [vmem:[#allocation5 + $0x958] sm:$0xff] }
 0x198   :  { %3683 = vmatpush1.bf16.msra.mxu0 %v4730_v22  ;;  %3887 = vmatpush1.bf16.msra.mxu1 %v4732_v23  ;;  %v323_v22 = vld [vmem:[#allocation5 + $0x7f0] sm:$0xff]  ;;  %v320_v23 = vld [vmem:[#allocation5 + $0x7d8] sm:$0xff] }
 0x199   :  { %3684 = vmatprep.subr.bf16.mxu0 %v4739_v25  ;;  %3888 = vmatprep.subr.bf16.mxu1 %v4741_v53  ;;  %v324_v25 = vld [vmem:[#allocation5 + $0x7f8] sm:$0xff]  ;;  %v4786_v53 = vcombine.low %v311_v55, %v315_v56  ;;  %v4795_v26 = vcombine.high %v319_v18, %v323_v22  ;;  %v367_v56 = vld [vmem:[#allocation5 + $0x950] sm:$0xff] }
 0x19a   :  { %v4797_v28 = vcombine.high %v320_v23, %v324_v25  ;;  %v4796_v37 = vcombine.low %v320_v23, %v324_v25  ;;  %v376_v23 = vld [vmem:[#allocation5 + $0x998] sm:$0xff] }
 0x19b   :  { %v380_v25 = vld [vmem:[#allocation5 + $0x9b8] sm:$0xff] }
 0x19c   :  { %3685 = vmatpush1.bf16.msra.mxu0 %v4738_v31  ;;  %3889 = vmatpush1.bf16.msra.mxu1 %v4740_v33  ;;  %v331_v31 = vld [vmem:[#allocation5 + $0x830] sm:$0xff]  ;;  %v328_v33 = vld [vmem:[#allocation5 + $0x818] sm:$0xff] }
 0x19d   :  { %3686 = vmatprep.subr.bf16.mxu0 %v4747_v58  ;;  %3890 = vmatprep.subr.bf16.mxu1 %v4749_v36  ;;  %v332_v58 = vld [vmem:[#allocation5 + $0x838] sm:$0xff]  ;;  %v4794_v36 = vcombine.low %v319_v18, %v323_v22  ;;  %v4803_v39 = vcombine.high %v327_v30, %v331_v31  ;;  %v375_v18 = vld [vmem:[#allocation5 + $0x990] sm:$0xff] }
 0x19e   :  { %v4805_v14 = vcombine.high %v328_v33, %v332_v58  ;;  %v4804_v45 = vcombine.low %v328_v33, %v332_v58  ;;  %v379_v22 = vld [vmem:[#allocation5 + $0x9b0] sm:$0xff]  ;;  %v388_v33 = vld [vmem:[#allocation5 + $0x9f8] sm:$0xff] }
 0x19f   :  { %v4850_v58 = vcombine.low %v375_v18, %v379_v22 }
 0x1a0   :  { %3687 = vmatpush1.bf16.msra.mxu0 %v4746_v41  ;;  %3891 = vmatpush1.bf16.msra.mxu1 %v4748_v43  ;;  %v339_v41 = vld [vmem:[#allocation5 + $0x870] sm:$0xff]  ;;  %v336_v43 = vld [vmem:[#allocation5 + $0x858] sm:$0xff] }
 0x1a1   :  { %3688 = vmatprep.subr.bf16.mxu0 %v4755_v32  ;;  %3892 = vmatprep.subr.bf16.mxu1 %v4757_v34  ;;  %v340_v32 = vld [vmem:[#allocation5 + $0x878] sm:$0xff]  ;;  %v4802_v34 = vcombine.low %v327_v30, %v331_v31  ;;  %v4811_v47 = vcombine.high %v335_v40, %v339_v41  ;;  %v387_v30 = vld [vmem:[#allocation5 + $0x9f0] sm:$0xff] }
 0x1a2   :  { %v4813_v24 = vcombine.high %v336_v43, %v340_v32  ;;  %v4812_v51 = vcombine.low %v336_v43, %v340_v32  ;;  %v384_v31 = vld [vmem:[#allocation5 + $0x9d8] sm:$0xff] }
 0x1a3   :  { %v396_v43 = vld [vmem:[#allocation5 + $0xa38] sm:$0xff] }
 0x1a4   :  { %3689 = vmatpush1.bf16.msra.mxu0 %v4754_v49  ;;  %3893 = vmatpush1.bf16.msra.mxu1 %v4756_v20  ;;  %v347_v49 = vld [vmem:[#allocation5 + $0x8b0] sm:$0xff]  ;;  %v344_v20 = vld [vmem:[#allocation5 + $0x898] sm:$0xff] }
 0x1a5   :  { %3690 = vmatprep.subr.bf16.mxu0 %v4763_v21  ;;  %3894 = vmatprep.subr.bf16.mxu1 %v4765_v50  ;;  %v348_v21 = vld [vmem:[#allocation5 + $0x8b8] sm:$0xff]  ;;  %v4810_v50 = vcombine.low %v335_v40, %v339_v41  ;;  %v4819_v57 = vcombine.high %v343_v48, %v347_v49  ;;  %v395_v40 = vld [vmem:[#allocation5 + $0xa30] sm:$0xff] }
 0x1a6   :  { %v4821_v59 = vcombine.high %v344_v20, %v348_v21  ;;  %v392_v41 = vld [vmem:[#allocation5 + $0xa18] sm:$0xff] }
 0x1a8   :  { %3691 = vmatpush1.bf16.msra.mxu0 %v4762_v60  ;;  %3895 = vmatpush1.bf16.msra.mxu1 %v4764_v63  ;;  %v355_v60 = vld [vmem:[#allocation5 + $0x8f0] sm:$0xff]  ;;  %v352_v63 = vld [vmem:[#allocation5 + $0x8d8] sm:$0xff] }
 0x1a9   :  { %3692 = vmatprep.subr.bf16.mxu0 %v4771_v1  ;;  %3896 = vmatprep.subr.bf16.mxu1 %v4773_v2  ;;  %v356_v1 = vld [vmem:[#allocation5 + $0x8f8] sm:$0xff]  ;;  %v4818_v2 = vcombine.low %v343_v48, %v347_v49  ;;  %v4827_v3 = vcombine.high %v351_v35, %v355_v60  ;;  %v403_v48 = vld [vmem:[#allocation5 + $0xa70] sm:$0xff] }
 0x1aa   :  { %v4829_v4 = vcombine.high %v352_v63, %v356_v1  ;;  %v400_v49 = vld [vmem:[#allocation5 + $0xa58] sm:$0xff] }
 0x1ac   :  { %3693 = vmatpush1.bf16.msra.mxu0 %v4770_v44  ;;  %3897 = vmatpush1.bf16.msra.mxu1 %v4772_v7  ;;  %v360_v44 = vld [vmem:[#allocation5 + $0x918] sm:$0xff] }
 0x1ad   :  { %3694 = vmatprep.subr.bf16.mxu0 %v4779_v8  ;;  %3898 = vmatprep.subr.bf16.mxu1 %v4781_v10  ;;  %v364_v7 = vld [vmem:[#allocation5 + $0x938] sm:$0xff]  ;;  %v4826_v8 = vcombine.low %v351_v35, %v355_v60  ;;  %v4835_v10 = vcombine.high %v359_v5, %v363_v6  ;;  %v411_v35 = vld [vmem:[#allocation5 + $0xab0] sm:$0xff] }
 0x1ae   :  { %v4837_v55 = vcombine.high %v360_v44, %v364_v7  ;;  %v408_v60 = vld [vmem:[#allocation5 + $0xa98] sm:$0xff] }
 0x1b0   :  { %3695 = vmatpush1.bf16.msra.mxu0 %v4778_v13  ;;  %3899 = vmatpush1.bf16.msra.mxu1 %v4780_v15  ;;  %v372_v13 = vld [vmem:[#allocation5 + $0x978] sm:$0xff]  ;;  %v4834_v15 = vcombine.low %v359_v5, %v363_v6  ;;  %v419_v5 = vld [vmem:[#allocation5 + $0xaf0] sm:$0xff] }
 0x1b1   :  { %3696 = vmatprep.subr.bf16.mxu0 %v4787_v16  ;;  %3900 = vmatprep.subr.bf16.mxu1 %v4789_v17  ;;  %v4836_v16 = vcombine.low %v360_v44, %v364_v7  ;;  %v4845_v17 = vcombine.high %v368_v12, %v372_v13  ;;  %v416_v6 = vld [vmem:[#allocation5 + $0xad8] sm:$0xff] }
 0x1b2   :  { %v420_v44 = vld [vmem:[#allocation5 + $0xaf8] sm:$0xff] }
 0x1b4   :  { %3697 = vmatpush1.bf16.msra.mxu0 %v4786_v53  ;;  %3901 = vmatpush1.bf16.msra.mxu1 %v4788_v54  ;;  %v4842_v53 = vcombine.low %v367_v56, %v371_v11  ;;  %v4844_v54 = vcombine.low %v368_v12, %v372_v13  ;;  %v428_v12 = vld [vmem:[#allocation5 + $0xb38] sm:$0xff] }
 0x1b5   :  { %3698 = vmatprep.subr.bf16.mxu0 %v4795_v26  ;;  %3902 = vmatprep.subr.bf16.mxu1 %v4797_v28  ;;  %v4851_v26 = vcombine.high %v375_v18, %v379_v22  ;;  %v383_v28 = vld [vmem:[#allocation5 + $0x9d0] sm:$0xff]  ;;  %v432_v22 = vld [vmem:[#allocation5 + $0xb58] sm:$0xff] }
 0x1b6   :  { %v4858_v32 = vcombine.low %v383_v28, %v387_v30  ;;  %v435_v18 = vld [vmem:[#allocation5 + $0xb70] sm:$0xff] }
 0x1b8   :  { %3699 = vmatpush1.bf16.msra.mxu0 %v4794_v36  ;;  %3903 = vmatpush1.bf16.msra.mxu1 %v4796_v37  ;;  %v4852_v36 = vcombine.low %v376_v23, %v380_v25  ;;  %v4859_v37 = vcombine.high %v383_v28, %v387_v30  ;;  %v443_v28 = vld [vmem:[#allocation5 + $0xbb0] sm:$0xff]  ;;  %v440_v30 = vld [vmem:[#allocation5 + $0xb98] sm:$0xff] }
 0x1b9   :  { %3719 = vmatprep.subr.bf16.mxu0 %v4803_v39  ;;  %3923 = vmatprep.subr.bf16.mxu1 %v4805_v14  ;;  %v4861_v39 = vcombine.high %v384_v31, %v388_v33  ;;  %v391_v14 = vld [vmem:[#allocation5 + $0xa10] sm:$0xff] }
 0x1bb   :  { %3701 = vmatmul.mubr.bf16.vlgmr.msra.gmra.mrb[8].mxu0 %v5515_v29  ;;  %3905 = vmatmul.mubr.bf16.vlgmr.msra.gmra.mrb[8].mxu1 %v5515_v29  ;;  %v4820_v29 = vcombine.low %v344_v20, %v348_v21  ;;  %v404_v20 = vld [vmem:[#allocation5 + $0xa78] sm:$0xff]  ;;  %v4866_v21 = vcombine.low %v391_v14, %v395_v40 }
 0x1bc   :  { %3720 = vmatpush1.bf16.msra.mxu0 %v4802_v34  ;;  %3924 = vmatpush1.bf16.msra.mxu1 %v4804_v45  ;;  %v4860_v34 = vcombine.low %v384_v31, %v388_v33  ;;  %v4867_v45 = vcombine.high %v391_v14, %v395_v40  ;;  %v444_v31 = vld [vmem:[#allocation5 + $0xbb8] sm:$0xff]  ;;  %v451_v14 = vld [vmem:[#allocation5 + $0xbf0] sm:$0xff] }
 0x1bd   :  { %3721 = vmatprep.subr.bf16.mxu0 %v4811_v47  ;;  %3925 = vmatprep.subr.bf16.mxu1 %v4813_v24  ;;  %v4869_v47 = vcombine.high %v392_v41, %v396_v43  ;;  %v399_v24 = vld [vmem:[#allocation5 + $0xa50] sm:$0xff]  ;;  %v448_v40 = vld [vmem:[#allocation5 + $0xbd8] sm:$0xff] }
 0x1be   :  { %3710 = vmatprep.mubr.bf16.mxu0 %v5517_v42  ;;  %3914 = vmatprep.mubr.bf16.mxu1 %v5517_v42  ;;  %v4828_v42 = vcombine.low %v352_v63, %v356_v1  ;;  %v412_v63 = vld [vmem:[#allocation5 + $0xab8] sm:$0xff]  ;;  %v4874_v1 = vcombine.low %v399_v24, %v403_v48 }
 0x1c0   :  { %3722 = vmatpush1.bf16.msra.mxu0 %v4810_v50  ;;  %3926 = vmatpush1.bf16.msra.mxu1 %v4812_v51  ;;  %v4868_v50 = vcombine.low %v392_v41, %v396_v43  ;;  %v4875_v51 = vcombine.high %v399_v24, %v403_v48  ;;  %v452_v41 = vld [vmem:[#allocation5 + $0xbf8] sm:$0xff]  ;;  %v459_v24 = vld [vmem:[#allocation5 + $0xc30] sm:$0xff] }
 0x1c1   :  { %3723 = vmatprep.subr.bf16.mxu0 %v4819_v57  ;;  %3927 = vmatprep.subr.bf16.mxu1 %v4821_v59  ;;  %v4877_v57 = vcombine.high %v400_v49, %v404_v20  ;;  %v407_v59 = vld [vmem:[#allocation5 + $0xa90] sm:$0xff]  ;;  %v456_v48 = vld [vmem:[#allocation5 + $0xc18] sm:$0xff] }
 0x1c2   :  { %v4882_v7 = vcombine.low %v407_v59, %v411_v35 }
 0x1c3   :  { %3711 = vmatmul.mubr.bf16.gmra.mrb[12].mxu0 %v5523_v52  ;;  %3915 = vmatmul.mubr.bf16.gmra.mrb[12].mxu1 %v5523_v52  ;;  %v4843_v52 = vcombine.high %v367_v56, %v371_v11  ;;  %v427_v56 = vld [vmem:[#allocation5 + $0xb30] sm:$0xff]  ;;  %v424_v11 = vld [vmem:[#allocation5 + $0xb18] sm:$0xff] }
 0x1c4   :  { %3724 = vmatpush1.bf16.msra.mxu0 %v4818_v2  ;;  %3928 = vmatpush1.bf16.msra.mxu1 %v4820_v29  ;;  %v4876_v2 = vcombine.low %v400_v49, %v404_v20  ;;  %v4883_v29 = vcombine.high %v407_v59, %v411_v35  ;;  %v460_v49 = vld [vmem:[#allocation5 + $0xc38] sm:$0xff]  ;;  %v467_v59 = vld [vmem:[#allocation5 + $0xc70] sm:$0xff] }
 0x1c5   :  { %3725 = vmatprep.subr.bf16.mxu0 %v4827_v3  ;;  %3929 = vmatprep.subr.bf16.mxu1 %v4829_v4  ;;  %v4885_v3 = vcombine.high %v408_v60, %v412_v63  ;;  %v415_v4 = vld [vmem:[#allocation5 + $0xad0] sm:$0xff]  ;;  %v464_v35 = vld [vmem:[#allocation5 + $0xc58] sm:$0xff] }
 0x1c6   :  { %3751 = vmatprep.mubr.bf16.mxu0 %v5531_v0  ;;  %3955 = vmatprep.mubr.bf16.mxu1 %v5531_v0  ;;  %v4853_v0 = vcombine.high %v376_v23, %v380_v25  ;;  %v4890_v13 = vcombine.low %v415_v4, %v419_v5  ;;  %v436_v23 = vld [vmem:[#allocation5 + $0xb78] sm:$0xff] }
 0x1c8   :  { %3726 = vmatpush1.bf16.msra.mxu0 %v4826_v8  ;;  %3930 = vmatpush1.bf16.msra.mxu1 %v4828_v42  ;;  %v4884_v8 = vcombine.low %v408_v60, %v412_v63  ;;  %v4891_v42 = vcombine.high %v415_v4, %v419_v5  ;;  %v468_v60 = vld [vmem:[#allocation5 + $0xc78] sm:$0xff]  ;;  %v475_v4 = vld [vmem:[#allocation5 + $0xcb0] sm:$0xff] }
 0x1c9   :  { %3727 = vmatprep.subr.bf16.mxu0 %v4835_v10  ;;  %3931 = vmatprep.subr.bf16.mxu1 %v4837_v55  ;;  %v4893_v10 = vcombine.high %v416_v6, %v420_v44  ;;  %v423_v55 = vld [vmem:[#allocation5 + $0xb10] sm:$0xff]  ;;  %v472_v5 = vld [vmem:[#allocation5 + $0xc98] sm:$0xff] }
 0x1ca   :  { %v4898_v25 = vcombine.low %v423_v55, %v427_v56 }
 0x1cc   :  { %3728 = vmatpush1.bf16.msra.mxu0 %v4834_v15  ;;  %3932 = vmatpush1.bf16.msra.mxu1 %v4836_v16  ;;  %v4892_v15 = vcombine.low %v416_v6, %v420_v44  ;;  %v4899_v16 = vcombine.high %v423_v55, %v427_v56  ;;  %v476_v6 = vld [vmem:[#allocation5 + $0xcb8] sm:$0xff]  ;;  %v483_v55 = vld [vmem:[#allocation5 + $0xcf0] sm:$0xff] }
 0x1cd   :  { %3729 = vmatprep.subr.bf16.mxu0 %v4843_v52  ;;  %3933 = vmatprep.subr.bf16.mxu1 %v4845_v17  ;;  %v4901_v52 = vcombine.high %v424_v11, %v428_v12  ;;  %v431_v17 = vld [vmem:[#allocation5 + $0xb50] sm:$0xff]  ;;  %v480_v56 = vld [vmem:[#allocation5 + $0xcd8] sm:$0xff] }
 0x1ce   :  { %v4906_v33 = vcombine.low %v431_v17, %v435_v18 }
 0x1d0   :  { %3730 = vmatpush1.bf16.msra.mxu0 %v4842_v53  ;;  %3934 = vmatpush1.bf16.msra.mxu1 %v4844_v54  ;;  %v4900_v53 = vcombine.low %v424_v11, %v428_v12  ;;  %v4907_v54 = vcombine.high %v431_v17, %v435_v18  ;;  %v484_v11 = vld [vmem:[#allocation5 + $0xcf8] sm:$0xff] }
 0x1d1   :  { %3731 = vmatprep.subr.bf16.mxu0 %v4851_v26  ;;  %3935 = vmatprep.subr.bf16.mxu1 %v4853_v0  ;;  %v4909_v26 = vcombine.high %v432_v22, %v436_v23  ;;  %v439_v0 = vld [vmem:[#allocation5 + $0xb90] sm:$0xff]  ;;  %v488_v17 = vld [vmem:[#allocation5 + $0xd18] sm:$0xff] }
 0x1d2   :  { %v4914_v43 = vcombine.low %v439_v0, %v443_v28  ;;  %v492_v18 = vld [vmem:[#allocation5 + $0xd38] sm:$0xff] }
 0x1d4   :  { %3732 = vmatpush1.bf16.msra.mxu0 %v4850_v58  ;;  %3936 = vmatpush1.bf16.msra.mxu1 %v4852_v36  ;;  %v4908_v58 = vcombine.low %v432_v22, %v436_v23  ;;  %v4915_v36 = vcombine.high %v439_v0, %v443_v28  ;;  %v500_v0 = vld [vmem:[#allocation5 + $0xd78] sm:$0xff] }
 0x1d5   :  { %3733 = vmatprep.subr.bf16.mxu0 %v4859_v37  ;;  %3937 = vmatprep.subr.bf16.mxu1 %v4861_v39  ;;  %v4917_v37 = vcombine.high %v440_v30, %v444_v31  ;;  %v447_v39 = vld [vmem:[#allocation5 + $0xbd0] sm:$0xff] }
 0x1d6   :  { %v4922_v20 = vcombine.low %v447_v39, %v451_v14 }
 0x1d8   :  { %3734 = vmatpush1.bf16.msra.mxu0 %v4858_v32  ;;  %3938 = vmatpush1.bf16.msra.mxu1 %v4860_v34  ;;  %v4916_v32 = vcombine.low %v440_v30, %v444_v31  ;;  %v4923_v34 = vcombine.high %v447_v39, %v451_v14  ;;  %v4964_v30 = vcombine.low %v488_v17, %v492_v18 }
 0x1d9   :  { %3735 = vmatprep.subr.bf16.mxu0 %v4867_v45  ;;  %3939 = vmatprep.subr.bf16.mxu1 %v4869_v47  ;;  %v4925_v45 = vcombine.high %v448_v40, %v452_v41  ;;  %v455_v47 = vld [vmem:[#allocation5 + $0xc10] sm:$0xff] }
 0x1da   :  { %v4930_v63 = vcombine.low %v455_v47, %v459_v24 }
 0x1dc   :  { %3736 = vmatpush1.bf16.msra.mxu0 %v4866_v21  ;;  %3940 = vmatpush1.bf16.msra.mxu1 %v4868_v50  ;;  %v4924_v21 = vcombine.low %v448_v40, %v452_v41  ;;  %v4931_v50 = vcombine.high %v455_v47, %v459_v24  ;;  %v512_v47 = vld [vmem:[#allocation5 + $0xdd8] sm:$0xff] }
 0x1dd   :  { %3737 = vmatprep.subr.bf16.mxu0 %v4875_v51  ;;  %3941 = vmatprep.subr.bf16.mxu1 %v4877_v57  ;;  %v4933_v51 = vcombine.high %v456_v48, %v460_v49  ;;  %v463_v57 = vld [vmem:[#allocation5 + $0xc50] sm:$0xff]  ;;  %v516_v24 = vld [vmem:[#allocation5 + $0xdf8] sm:$0xff] }
 0x1de   :  { %v4938_v44 = vcombine.low %v463_v57, %v467_v59 }
 0x1e0   :  { %3738 = vmatpush1.bf16.msra.mxu0 %v4874_v1  ;;  %3942 = vmatpush1.bf16.msra.mxu1 %v4876_v2  ;;  %v4932_v1 = vcombine.low %v456_v48, %v460_v49  ;;  %v4939_v2 = vcombine.high %v463_v57, %v467_v59 }
 0x1e1   :  { %3739 = vmatprep.subr.bf16.mxu0 %v4883_v29  ;;  %3943 = vmatprep.subr.bf16.mxu1 %v4885_v3  ;;  %v4941_v29 = vcombine.high %v464_v35, %v468_v60  ;;  %v471_v3 = vld [vmem:[#allocation5 + $0xc90] sm:$0xff] }
 0x1e2   :  { %v4946_v12 = vcombine.low %v471_v3, %v475_v4 }
 0x1e4   :  { %3740 = vmatpush1.bf16.msra.mxu0 %v4882_v7  ;;  %3944 = vmatpush1.bf16.msra.mxu1 %v4884_v8  ;;  %v4940_v7 = vcombine.low %v464_v35, %v468_v60  ;;  %v4947_v8 = vcombine.high %v471_v3, %v475_v4  ;;  %v4989_v35 = vcombine.high %v512_v47, %v516_v24  ;;  %v519_v60 = vld [vmem:[#allocation5 + $0xe10] sm:$0xff] }
 0x1e5   :  { %3741 = vmatprep.subr.bf16.mxu0 %v4891_v42  ;;  %3945 = vmatprep.subr.bf16.mxu1 %v4893_v10  ;;  %v4949_v42 = vcombine.high %v472_v5, %v476_v6  ;;  %v479_v10 = vld [vmem:[#allocation5 + $0xcd0] sm:$0xff]  ;;  %v4988_v3 = vcombine.low %v512_v47, %v516_v24 }
 0x1e6   :  { %v4954_v22 = vcombine.low %v479_v10, %v483_v55  ;;  %v559_v24 = vld [vmem:[#allocation5 + $0xf50] sm:$0xff] }
 0x1e8   :  { %3742 = vmatpush1.bf16.msra.mxu0 %v4890_v13  ;;  %3946 = vmatpush1.bf16.msra.mxu1 %v4892_v15  ;;  %v4955_v13 = vcombine.high %v479_v10, %v483_v55  ;;  %v4957_v15 = vcombine.high %v480_v56, %v484_v11  ;;  %v528_v10 = vld [vmem:[#allocation5 + $0xe58] sm:$0xff] }
 0x1e9   :  { %3743 = vmatprep.subr.bf16.mxu0 %v4899_v16  ;;  %3947 = vmatprep.subr.bf16.mxu1 %v4901_v52  ;;  %v487_v16 = vld [vmem:[#allocation5 + $0xd10] sm:$0xff]  ;;  %v532_v55 = vld [vmem:[#allocation5 + $0xe78] sm:$0xff] }
 0x1ea   :  { %v491_v52 = vld [vmem:[#allocation5 + $0xd30] sm:$0xff] }
 0x1eb   :  { %v4963_v23 = vcombine.high %v487_v16, %v491_v52  ;;  %v4962_v28 = vcombine.low %v487_v16, %v491_v52 }
 0x1ec   :  { %3744 = vmatpush1.bf16.msra.mxu0 %v4898_v25  ;;  %3948 = vmatpush1.bf16.msra.mxu1 %v4900_v53  ;;  %v4965_v25 = vcombine.high %v488_v17, %v492_v18  ;;  %v495_v53 = vld [vmem:[#allocation5 + $0xd50] sm:$0xff]  ;;  %v5005_v17 = vcombine.high %v528_v10, %v532_v55 }
 0x1ed   :  { %3745 = vmatprep.subr.bf16.mxu0 %v4907_v54  ;;  %3949 = vmatprep.subr.bf16.mxu1 %v4909_v26  ;;  %v499_v54 = vld [vmem:[#allocation5 + $0xd70] sm:$0xff]  ;;  %v496_v26 = vld [vmem:[#allocation5 + $0xd58] sm:$0xff] }
 0x1ee   :  { %v4973_v31 = vcombine.high %v496_v26, %v500_v0  ;;  %v4970_v39 = vcombine.low %v495_v53, %v499_v54  ;;  %v4972_v14 = vcombine.low %v496_v26, %v500_v0  ;;  %v535_v18 = vld [vmem:[#allocation5 + $0xe90] sm:$0xff] }
 0x1ef   :  { %v543_v0 = vld [vmem:[#allocation5 + $0xed0] sm:$0xff] }
 0x1f0   :  { %3746 = vmatpush1.bf16.msra.mxu0 %v4906_v33  ;;  %3950 = vmatpush1.bf16.msra.mxu1 %v4908_v58  ;;  %v503_v33 = vld [vmem:[#allocation5 + $0xd90] sm:$0xff] }
 0x1f1   :  { %3747 = vmatprep.subr.bf16.mxu0 %v4915_v36  ;;  %3951 = vmatprep.subr.bf16.mxu1 %v4917_v37  ;;  %v507_v58 = vld [vmem:[#allocation5 + $0xdb0] sm:$0xff]  ;;  %v504_v36 = vld [vmem:[#allocation5 + $0xd98] sm:$0xff] }
 0x1f2   :  { %v508_v37 = vld [vmem:[#allocation5 + $0xdb8] sm:$0xff]  ;;  %v4979_v40 = vcombine.high %v503_v33, %v507_v58 }
 0x1f4   :  { %3748 = vmatpush1.bf16.msra.mxu0 %v4914_v43  ;;  %3952 = vmatpush1.bf16.msra.mxu1 %v4916_v32  ;;  %v511_v43 = vld [vmem:[#allocation5 + $0xdd0] sm:$0xff] }
 0x1f5   :  { %3749 = vmatprep.subr.bf16.mxu0 %v4923_v34  ;;  %3953 = vmatprep.subr.bf16.mxu1 %v4925_v45  ;;  %v515_v32 = vld [vmem:[#allocation5 + $0xdf0] sm:$0xff] }
 0x1f6   :  { %v4987_v57 = vcombine.high %v511_v43, %v515_v32 }
 0x1f8   :  { %3750 = vmatpush1.bf16.msra.mxu0 %v4922_v20  ;;  %3954 = vmatpush1.bf16.msra.mxu1 %v4924_v21  ;;  %v4978_v20 = vcombine.low %v503_v33, %v507_v58 }
 0x1f9   :  { %3770 = vmatprep.subr.bf16.mxu0 %v4931_v50  ;;  %3974 = vmatprep.subr.bf16.mxu1 %v4933_v51  ;;  %v4980_v51 = vcombine.low %v504_v36, %v508_v37 }
 0x1fb   :  { %3752 = vmatmul.mubr.bf16.vlgmr.msra.gmra.mrb[8].mxu0 %v5539_v62  ;;  %3956 = vmatmul.mubr.bf16.vlgmr.msra.gmra.mrb[8].mxu1 %v5539_v62  ;;  %v4948_v62 = vcombine.low %v472_v5, %v476_v6 }
 0x1fc   :  { %3771 = vmatpush1.bf16.msra.mxu0 %v4930_v63  ;;  %3975 = vmatpush1.bf16.msra.mxu1 %v4932_v1  ;;  %v523_v63 = vld [vmem:[#allocation5 + $0xe30] sm:$0xff]  ;;  %v520_v1 = vld [vmem:[#allocation5 + $0xe18] sm:$0xff] }
 0x1fd   :  { %3772 = vmatprep.subr.bf16.mxu0 %v4939_v2  ;;  %3976 = vmatprep.subr.bf16.mxu1 %v4941_v29  ;;  %v524_v2 = vld [vmem:[#allocation5 + $0xe38] sm:$0xff]  ;;  %v4986_v29 = vcombine.low %v511_v43, %v515_v32  ;;  %v4995_v4 = vcombine.high %v519_v60, %v523_v63 }
 0x1fe   :  { %3761 = vmatprep.mubr.bf16.mxu0 %v5541_v9  ;;  %3965 = vmatprep.mubr.bf16.mxu1 %v5541_v9  ;;  %v4956_v9 = vcombine.low %v480_v56, %v484_v11  ;;  %v4997_v6 = vcombine.high %v520_v1, %v524_v2 }
 0x200   :  { %3773 = vmatpush1.bf16.msra.mxu0 %v4938_v44  ;;  %3977 = vmatpush1.bf16.msra.mxu1 %v4940_v7  ;;  %v527_v44 = vld [vmem:[#allocation5 + $0xe50] sm:$0xff] }
 0x201   :  { %3774 = vmatprep.subr.bf16.mxu0 %v4947_v8  ;;  %3978 = vmatprep.subr.bf16.mxu1 %v4949_v42  ;;  %v531_v7 = vld [vmem:[#allocation5 + $0xe70] sm:$0xff] }
 0x202   :  { %v5003_v16 = vcombine.high %v527_v44, %v531_v7 }
 0x203   :  { %3762 = vmatmul.mubr.bf16.gmra.mrb[12].mxu0 %v5547_v19  ;;  %3966 = vmatmul.mubr.bf16.gmra.mrb[12].mxu1 %v5547_v19  ;;  %v4971_v19 = vcombine.high %v495_v53, %v499_v54  ;;  %v5004_v53 = vcombine.low %v528_v10, %v532_v55  ;;  %v575_v55 = vld [vmem:[#allocation5 + $0xfd0] sm:$0xff] }
 0x204   :  { %3775 = vmatpush1.bf16.msra.mxu0 %v4946_v12  ;;  %3979 = vmatpush1.bf16.msra.mxu1 %v4948_v62  ;;  %v4994_v12 = vcombine.low %v519_v60, %v523_v63 }
 0x205   :  { %3776 = vmatprep.subr.bf16.mxu0 %v4955_v13  ;;  %3980 = vmatprep.subr.bf16.mxu1 %v4957_v15  ;;  %v4996_v15 = vcombine.low %v520_v1, %v524_v2  ;;  %v567_v2 = vld [vmem:[#allocation5 + $0xf90] sm:$0xff] }
 0x206   :  { %3802 = vmatprep.mubr.bf16.mxu0 %v5555_v27  ;;  %4006 = vmatprep.mubr.bf16.mxu1 %v5555_v27  ;;  %v4981_v27 = vcombine.high %v504_v36, %v508_v37  ;;  %v551_v37 = vld [vmem:[#allocation5 + $0xf10] sm:$0xff] }
 0x208   :  { %3777 = vmatpush1.bf16.msra.mxu0 %v4954_v22  ;;  %3981 = vmatpush1.bf16.msra.mxu1 %v4956_v9  ;;  %v539_v22 = vld [vmem:[#allocation5 + $0xeb0] sm:$0xff]  ;;  %v536_v9 = vld [vmem:[#allocation5 + $0xe98] sm:$0xff] }
 0x209   :  { %3778 = vmatprep.subr.bf16.mxu0 %v4963_v23  ;;  %3982 = vmatprep.subr.bf16.mxu1 %v4965_v25  ;;  %v540_v23 = vld [vmem:[#allocation5 + $0xeb8] sm:$0xff]  ;;  %v5002_v25 = vcombine.low %v527_v44, %v531_v7  ;;  %v5011_v54 = vcombine.high %v535_v18, %v539_v22 }
 0x20a   :  { %v5013_v26 = vcombine.high %v536_v9, %v540_v23  ;;  %v5012_v33 = vcombine.low %v536_v9, %v540_v23  ;;  %v5257_v9 = vld [vmem:[#allocation7 + $0xc0] sm:$0xff]  }
 0x20b   :  { %v5258_v23 = vld [vmem:[#allocation7] sm:$0xff]  }
 0x20c   :  { %3779 = vmatpush1.bf16.msra.mxu0 %v4962_v28  ;;  %3983 = vmatpush1.bf16.msra.mxu1 %v4964_v30  ;;  %v547_v28 = vld [vmem:[#allocation5 + $0xef0] sm:$0xff]  ;;  %v544_v30 = vld [vmem:[#allocation5 + $0xed8] sm:$0xff] }
 0x20d   :  { %3780 = vmatprep.subr.bf16.mxu0 %v4971_v19  ;;  %3984 = vmatprep.subr.bf16.mxu1 %v4973_v31  ;;  %v548_v19 = vld [vmem:[#allocation5 + $0xef8] sm:$0xff]  ;;  %v5010_v31 = vcombine.low %v535_v18, %v539_v22  ;;  %v5019_v58 = vcombine.high %v543_v0, %v547_v28  ;;  %v5256_v22 = vld [vmem:[#allocation7 + $0x40] sm:$0xff]  }
 0x20e   :  { %v5601_v41 = vpop.f32.mrb[0].mxu0  ;;  %v5603_v34 = vpop.f32.mrb[0].mxu1  ;;  %v5021_v36 = vcombine.high %v544_v30, %v548_v19  ;;  %v5020_v43 = vcombine.low %v544_v30, %v548_v19  ;;  %v5265_v30 = vld [vmem:[#allocation7 + $0xd0] sm:$0xff]  }
 0x20f   :  { %v5605_v45 = vpop.f32.mrb[1].mxu0  ;;  %v5607_v48 = vpop.f32.mrb[1].mxu1  ;;  %v5267_v19 = vld [vmem:[#allocation7 + $0x90] sm:$0xff]  }
 0x210   :  { %v5609_v49 = vpop.f32.mrb[2].mxu0  ;;  %3781 = vmatpush1.bf16.msra.mxu0 %v4970_v39  ;;  %v5611_v21 = vpop.f32.mrb[2].mxu1  ;;  %3985 = vmatpush1.bf16.msra.mxu1 %v4972_v14  ;;  %v555_v39 = vld [vmem:[#allocation5 + $0xf30] sm:$0xff]  ;;  %v552_v14 = vld [vmem:[#allocation5 + $0xf18] sm:$0xff] }
 0x211   :  { %v5613_v50 = vpop.f32.mrb[3].mxu0  ;;  %3782 = vmatprep.subr.bf16.mxu0 %v4979_v40  ;;  %v5615_v59 = vpop.f32.mrb[3].mxu1  ;;  %3986 = vmatprep.subr.bf16.mxu1 %v4981_v27  ;;  %v556_v40 = vld [vmem:[#allocation5 + $0xf38] sm:$0xff]  ;;  %v5018_v27 = vcombine.low %v543_v0, %v547_v28  ;;  %v5027_v32 = vcombine.high %v551_v37, %v555_v39  ;;  %v5263_v0 = vld [vmem:[#allocation7 + $0x88] sm:$0xff]   ;;  %v5264_v28 = vld [vmem:[#allocation7 + $0x50] sm:$0xff]  }
 0x212   :  { %v5029_v47 = vcombine.high %v552_v14, %v556_v40  ;;  %v5028_v60 = vcombine.low %v552_v14, %v556_v40  ;;  %v5276_v14 = vld [vmem:[#allocation7 + $0x68] sm:$0xff]  }
 0x213   :  { %v5277_v40 = vld [vmem:[#allocation7 + $0xe8] sm:$0xff]  }
 0x214   :  { %3783 = vmatpush1.bf16.msra.mxu0 %v4978_v20  ;;  %3987 = vmatpush1.bf16.msra.mxu1 %v4980_v51  ;;  %v563_v20 = vld [vmem:[#allocation5 + $0xf70] sm:$0xff]  ;;  %v560_v51 = vld [vmem:[#allocation5 + $0xf58] sm:$0xff] }
 0x215   :  { %3784 = vmatprep.subr.bf16.mxu0 %v4987_v57  ;;  %3988 = vmatprep.subr.bf16.mxu1 %v4989_v35  ;;  %v564_v57 = vld [vmem:[#allocation5 + $0xf78] sm:$0xff]  ;;  %v5026_v35 = vcombine.low %v551_v37, %v555_v39  ;;  %v5035_v63 = vcombine.high %v559_v24, %v563_v20  ;;  %v5273_v37 = vld [vmem:[#allocation7 + $0xe0] sm:$0xff]  }
 0x216   :  { %v5617_v5 = vpop.f32.mrb[4].mxu0  ;;  %v5619_v8 = vpop.f32.mrb[4].mxu1  ;;  %v5037_v1 = vcombine.high %v560_v51, %v564_v57  ;;  %v5036_v44 = vcombine.low %v560_v51, %v564_v57  ;;  %v5274_v39 = vld [vmem:[#allocation7 + $0x20] sm:$0xff]   ;;  %v5284_v51 = vld [vmem:[#allocation7 + $0x78] sm:$0xff]  }
 0x217   :  { %v5621_v42 = vpop.f32.mrb[5].mxu0  ;;  %v5623_v56 = vpop.f32.mrb[5].mxu1  ;;  %v5285_v57 = vld [vmem:[#allocation7 + $0xf8] sm:$0xff]  }
 0x218   :  { %v3410_v11 = vpop.f32.mrb[6].mxu0  ;;  %3785 = vmatpush1.bf16.msra.mxu0 %v4986_v29  ;;  %v3614_v62 = vpop.f32.mrb[6].mxu1  ;;  %3989 = vmatpush1.bf16.msra.mxu1 %v4988_v3  ;;  %v571_v29 = vld [vmem:[#allocation5 + $0xfb0] sm:$0xff]  ;;  %v568_v3 = vld [vmem:[#allocation5 + $0xf98] sm:$0xff] }
 0x219   :  { %v3411_v13 = vpop.f32.mrb[7].mxu0  ;;  %3786 = vmatprep.subr.bf16.mxu0 %v4995_v4  ;;  %v3615_v52 = vpop.f32.mrb[7].mxu1  ;;  %3990 = vmatprep.subr.bf16.mxu1 %v4997_v6  ;;  %v572_v4 = vld [vmem:[#allocation5 + $0xfb8] sm:$0xff]  ;;  %v5034_v6 = vcombine.low %v559_v24, %v563_v20  ;;  %v5043_v7 = vcombine.high %v567_v2, %v571_v29  ;;  %v579_v11 = vld [vmem:[#allocation5 + $0xff0] sm:$0xff] }
 0x21a   :  { %v5045_v10 = vcombine.high %v568_v3, %v572_v4  ;;  %v580_v62 = vld [vmem:[#allocation5 + $0xff8] sm:$0xff]  ;;  %v5042_v13 = vcombine.low %v567_v2, %v571_v29  ;;  %v5282_v24 = vld [vmem:[#allocation7 + $0x30] sm:$0xff]   ;;  %v4026_v29 = vmul.f32 %v5605_v45, %v5605_v45  ;;  %v4032_v45 = vmul.f32 %v5615_v59, %v5615_v59 }
 0x21b   :  { %v5283_v20 = vld [vmem:[#allocation7 + $0xb0] sm:$0xff]  }
 0x21c   :  { %3787 = vmatpush1.bf16.msra.mxu0 %v4994_v12  ;;  %3991 = vmatpush1.bf16.msra.mxu1 %v4996_v15  ;;  %v576_v12 = vld [vmem:[#allocation5 + $0xfd8] sm:$0xff]  ;;  %v5044_v15 = vcombine.low %v568_v3, %v572_v4  ;;  %v4028_v3 = vmul.f32 %v5607_v48, %v5607_v48  ;;  %v4029_v4 = vmul.f32 %v5609_v49, %v5609_v49 }
 0x21d   :  { %3788 = vmatprep.subr.bf16.mxu0 %v5003_v16  ;;  %3992 = vmatprep.subr.bf16.mxu1 %v5005_v17  ;;  %v5051_v16 = vcombine.high %v575_v55, %v579_v11  ;;  %v5053_v52 = vcombine.high %v576_v12, %v580_v62  ;;  %v5050_v17 = vcombine.low %v575_v55, %v579_v11 }
 0x21e   :  { %v5052_v18 = vcombine.low %v576_v12, %v580_v62 }
 0x220   :  { %3789 = vmatpush1.bf16.msra.mxu0 %v5002_v25  ;;  %3993 = vmatpush1.bf16.msra.mxu1 %v5004_v53  ;;  %v5259_v25 = vld [vmem:[#allocation7 + $0x80] sm:$0xff]   ;;  %v5260_v53 = vld [vmem:[#allocation7 + $0x48] sm:$0xff]  }
 0x221   :  { %3790 = vmatprep.subr.bf16.mxu0 %v5011_v54  ;;  %3994 = vmatprep.subr.bf16.mxu1 %v5013_v26  ;;  %v5261_v54 = vld [vmem:[#allocation7 + $0xc8] sm:$0xff]  }
 0x222   :  { %v5262_v26 = vld [vmem:[#allocation7 + $0x8] sm:$0xff]  }
 0x224   :  { %3791 = vmatpush1.bf16.msra.mxu0 %v5010_v31  ;;  %3995 = vmatpush1.bf16.msra.mxu1 %v5012_v33  ;;  %v5269_v31 = vld [vmem:[#allocation7 + $0xd8] sm:$0xff]  }
 0x225   :  { %3792 = vmatprep.subr.bf16.mxu0 %v5019_v58  ;;  %3996 = vmatprep.subr.bf16.mxu1 %v5021_v36  ;;  %v5270_v33 = vld [vmem:[#allocation7 + $0x18] sm:$0xff]   ;;  %v5272_v36 = vld [vmem:[#allocation7 + $0x60] sm:$0xff]  }
 0x226   :  { %v5271_v58 = vld [vmem:[#allocation7 + $0x98] sm:$0xff]  }
 0x228   :  { %3793 = vmatpush1.bf16.msra.mxu0 %v5018_v27  ;;  %3997 = vmatpush1.bf16.msra.mxu1 %v5020_v43  ;;  %v5278_v27 = vld [vmem:[#allocation7 + $0x28] sm:$0xff]  }
 0x229   :  { %3794 = vmatprep.subr.bf16.mxu0 %v5027_v32  ;;  %3998 = vmatprep.subr.bf16.mxu1 %v5029_v47  ;;  %v5279_v43 = vld [vmem:[#allocation7 + $0xa8] sm:$0xff]   ;;  %v5280_v32 = vld [vmem:[#allocation7 + $0x70] sm:$0xff]  }
 0x22a   :  { %v5281_v47 = vld [vmem:[#allocation7 + $0xf0] sm:$0xff]  }
 0x22c   :  { %3795 = vmatpush1.bf16.msra.mxu0 %v5026_v35  ;;  %3999 = vmatpush1.bf16.msra.mxu1 %v5028_v60  ;;  %v5286_v35 = vld [vmem:[#allocation7 + $0x38] sm:$0xff]  }
 0x22d   :  { %3796 = vmatprep.subr.bf16.mxu0 %v5035_v63  ;;  %4000 = vmatprep.subr.bf16.mxu1 %v5037_v1  ;;  %v5287_v60 = vld [vmem:[#allocation7 + $0xb8] sm:$0xff]   ;;  %v4025_v63 = vmul.f32 %v5601_v41, %v5601_v41  ;;  %v4027_v1 = vmul.f32 %v5603_v34, %v5603_v34  ;;  %v4030_v41 = vmul.f32 %v5613_v50, %v5613_v50 }
 0x230   :  { %3797 = vmatpush1.bf16.msra.mxu0 %v5034_v6  ;;  %4001 = vmatpush1.bf16.msra.mxu1 %v5036_v44 }
 0x231   :  { %3798 = vmatprep.subr.bf16.mxu0 %v5043_v7  ;;  %4002 = vmatprep.subr.bf16.mxu1 %v5045_v10  ;;  %v4031_v10 = vmul.f32 %v5611_v21, %v5611_v21 }
 0x234   :  { %3799 = vmatpush1.bf16.msra.mxu0 %v5042_v13  ;;  %4003 = vmatpush1.bf16.msra.mxu1 %v5044_v15 }
 0x235   :  { %3800 = vmatprep.subr.bf16.mxu0 %v5051_v16  ;;  %4004 = vmatprep.subr.bf16.mxu1 %v5053_v52 }
 0x238   :  { %3801 = vmatpush1.bf16.msra.mxu0 %v5050_v17  ;;  %4005 = vmatpush1.bf16.msra.mxu1 %v5052_v18 }
 0x239   :  { %5086 = vmatprep.subr.bf16.mxu0 %v5256_v22  ;;  %5114 = vmatprep.subr.bf16.mxu1 %v5257_v9 }
 0x23b   :  { %3803 = vmatmul.mubr.bf16.vlgmr.msra.gmra.mrb[8].mxu0 %v5563_v38  ;;  %4007 = vmatmul.mubr.bf16.vlgmr.msra.gmra.mrb[8].mxu1 %v5563_v38  ;;  %v5266_v38 = vld [vmem:[#allocation7 + $0x10] sm:$0xff]  }
 0x23c   :  { %3812 = vmatprep.mubr.bf16.mxu0 %v5565_v46  ;;  %4016 = vmatprep.mubr.bf16.mxu1 %v5565_v46  ;;  %v5268_v46 = vld [vmem:[#allocation7 + $0x58] sm:$0xff]  }
 0x23d   :  { %5087 = vmatpush3.bf16.msra.mxu0 %v5258_v23  ;;  %5115 = vmatpush3.bf16.msra.mxu1 %v5259_v25 }
 0x23e   :  { %5088 = vmatprep.subr.bf16.mxu0 %v5260_v53  ;;  %5116 = vmatprep.subr.bf16.mxu1 %v5261_v54  ;;  %v4033_v54 = vmul.f32 %v5617_v5, %v5617_v5  ;;  %v4036_v5 = vmul.f32 %v5623_v56, %v5623_v56 }
 0x241   :  { %5089 = vmatpush3.bf16.msra.mxu0 %v5262_v26  ;;  %5117 = vmatpush3.bf16.msra.mxu1 %v5263_v0  ;;  %v4035_v26 = vmul.f32 %v5619_v8, %v5619_v8 }
 0x242   :  { %5090 = vmatprep.subr.bf16.mxu0 %v5264_v28  ;;  %5118 = vmatprep.subr.bf16.mxu1 %v5265_v30 }
 0x243   :  { %3813 = vmatmul.mubr.bf16.gmra.mrb[12].mxu0 %v5571_v61  ;;  %4017 = vmatmul.mubr.bf16.gmra.mrb[12].mxu1 %v5571_v61  ;;  %v5275_v61 = vld [vmem:[#allocation7 + $0xa0] sm:$0xff]  }
 0x245   :  { %5091 = vmatpush3.bf16.msra.mxu0 %v5266_v38  ;;  %5119 = vmatpush3.bf16.msra.mxu1 %v5267_v19  ;;  %v4034_v38 = vmul.f32 %v5621_v42, %v5621_v42 }
 0x246   :  { %5092 = vmatprep.subr.bf16.mxu0 %v5268_v46  ;;  %5120 = vmatprep.subr.bf16.mxu1 %v5269_v31 }
 0x249   :  { %5093 = vmatpush3.bf16.msra.mxu0 %v5270_v33  ;;  %5121 = vmatpush3.bf16.msra.mxu1 %v5271_v58 }
 0x24a   :  { %5094 = vmatprep.subr.bf16.mxu0 %v5272_v36  ;;  %5122 = vmatprep.subr.bf16.mxu1 %v5273_v37 }
 0x24d   :  { %5095 = vmatpush3.bf16.msra.mxu0 %v5274_v39  ;;  %5123 = vmatpush3.bf16.msra.mxu1 %v5275_v61 }
 0x24e   :  { %5096 = vmatprep.subr.bf16.mxu0 %v5276_v14  ;;  %5124 = vmatprep.subr.bf16.mxu1 %v5277_v40 }
 0x251   :  { %5097 = vmatpush3.bf16.msra.mxu0 %v5278_v27  ;;  %5125 = vmatpush3.bf16.msra.mxu1 %v5279_v43 }
 0x252   :  { %5098 = vmatprep.subr.bf16.mxu0 %v5280_v32  ;;  %5126 = vmatprep.subr.bf16.mxu1 %v5281_v47 }
 0x255   :  { %5099 = vmatpush3.bf16.msra.mxu0 %v5282_v24  ;;  %5127 = vmatpush3.bf16.msra.mxu1 %v5283_v20 }
 0x256   :  { %5100 = vmatprep.subr.bf16.mxu0 %v5284_v51  ;;  %5128 = vmatprep.subr.bf16.mxu1 %v5285_v57 }
 0x259   :  { %5101 = vmatpush3.bf16.msra.mxu0 %v5286_v35  ;;  %5129 = vmatpush3.bf16.msra.mxu1 %v5287_v60 }
 0x30e   :  { %v3804_v2 = vpop.f32.mrb[8].mxu0  ;;  %v4008_v44 = vpop.f32.mrb[8].mxu1 }
 0x30f   :  { %v4037_v6 = vmul.f32 %v3804_v2, %v3804_v2  ;;  %v3806_v7 = vpop.f32.mrb[9].mxu0  ;;  %v4039_v34 = vmul.f32 %v4008_v44, %v4008_v44  ;;  %v4010_v11 = vpop.f32.mrb[9].mxu1 }
 0x310   :  { %v4038_v55 = vmul.f32 %v3806_v7, %v3806_v7  ;;  %v3808_v12 = vpop.f32.mrb[10].mxu0  ;;  %v4040_v62 = vmul.f32 %v4010_v11, %v4010_v11  ;;  %v4012_v13 = vpop.f32.mrb[10].mxu1 }
 0x311   :  { %v5647_v48 = vadd.f32 %v4037_v6, %v4025_v63  ;;  %v4041_v49 = vmul.f32 %v3808_v12, %v3808_v12  ;;  %v3810_v15 = vpop.f32.mrb[11].mxu0  ;;  %v5649_v16 = vadd.f32 %v4039_v34, %v4027_v1  ;;  %v4043_v21 = vmul.f32 %v4012_v13, %v4012_v13  ;;  %v4014_v50 = vpop.f32.mrb[11].mxu1 }
 0x312   :  { %v5651_v52 = vadd.f32 %v4038_v55, %v4026_v29  ;;  %v4042_v17 = vmul.f32 %v3810_v15, %v3810_v15  ;;  %v5654_v18 = vadd.f32 %v4040_v62, %v4028_v3  ;;  %v4044_v59 = vmul.f32 %v4014_v50, %v4014_v50 }
 0x313   :  { %5288 = vrsqrt.f32 %v5647_v48  ;;  %v5656_v22 = vadd.f32 %v4041_v49, %v4029_v4  ;;  %v5659_v9 = vadd.f32 %v4043_v21, %v4031_v10  ;;  %vm4063_vm4 = vcmp.eq.f32.partialorder %v5647_v48, inf }
 0x314   :  { %5290 = vrsqrt.f32 %v5649_v16  ;;  %v5661_v23 = vadd.f32 %v4042_v17, %v4030_v41  ;;  %v5664_v25 = vadd.f32 %v4044_v59, %v4032_v45  ;;  %vm4070_vm0 = vcmp.eq.f32.partialorder %v5651_v52, inf }
 0x315   :  { %5292 = vrsqrt.f32 %v5651_v52  ;;  %v4073_v56 = vand.u32 2147483648, %v5651_v52  ;;  %vm4084_vm1 = vcmp.eq.f32.partialorder %v5654_v18, inf  ;;  %vm4072_vm2 = vcmp.eq.f32.partialorder %v5651_v52, 0.0 }
 0x316   :  { %5294 = vrsqrt.f32 %v5654_v18  ;;  %v3814_v53 = vpop.f32.mrb[12].mxu0  ;;  %v4018_v28 = vpop.f32.mrb[12].mxu1  ;;  %v4101_v40 = vand.u32 2147483648, %v5661_v23  ;;  %vm4098_vm3 = vcmp.eq.f32.partialorder %v5661_v23, inf  ;;  %v4087_v43 = vand.u32 2147483648, %v5654_v18 }
 0x317   :  { %5296 = vrsqrt.f32 %v5656_v22  ;;  %v4045_v0 = vmul.f32 %v3814_v53, %v3814_v53  ;;  %v3816_v30 = vpop.f32.mrb[13].mxu0  ;;  %v4047_v19 = vmul.f32 %v4018_v28, %v4018_v28  ;;  %v4020_v31 = vpop.f32.mrb[13].mxu1  ;;  %v4115_v32 = vand.u32 2147483648, %v5664_v25 }
 0x318   :  { %5298 = vrsqrt.f32 %v5659_v9  ;;  %v4046_v46 = vmul.f32 %v3816_v30, %v3816_v30  ;;  %v3818_v33 = vpop.f32.mrb[14].mxu0  ;;  %v4048_v58 = vmul.f32 %v4020_v31, %v4020_v31  ;;  %v4022_v36 = vpop.f32.mrb[14].mxu1  ;;  %vm4100_vm5 = vcmp.eq.f32.partialorder %v5661_v23, 0.0 }
 0x319   :  { %5300 = vrsqrt.f32 %v5661_v23  ;;  %v5678_v8 = vadd.f32 %v4045_v0, %v4033_v54  ;;  %v3819_v37 = vpop.f32.mrb[15].mxu0  ;;  %v5681_v39 = vadd.f32 %v4047_v19, %v4035_v26  ;;  %v4023_v61 = vpop.f32.mrb[15].mxu1  ;;  %vm4112_vm6 = vcmp.eq.f32.partialorder %v5664_v25, inf }
 0x31a   :  { %5302 = vrsqrt.f32 %v5664_v25  ;;  %v5683_v42 = vadd.f32 %v4046_v46, %v4034_v38  ;;  %v5686_v14 = vadd.f32 %v4048_v58, %v4036_v5  ;;  %vm4065_vm7 = vcmp.eq.f32.partialorder %v5647_v48, 0.0 }
 0x31b   :  { %5304 = vrsqrt.f32 %v5678_v8  ;;  %v4066_v20 = vand.u32 2147483648, %v5647_v48  ;;  %vm4086_vm8 = vcmp.eq.f32.partialorder %v5654_v18, 0.0  ;;  %vm4114_vm9 = vcmp.eq.f32.partialorder %v5664_v25, 0.0 }
 0x31c   :  { %5306 = vrsqrt.f32 %v5681_v39  ;;  %vm4091_vm10 = vcmp.eq.f32.partialorder %v5656_v22, inf  ;;  %vm4093_vm11 = vcmp.eq.f32.partialorder %v5656_v22, 0.0  ;;  %v4094_v57 = vand.u32 2147483648, %v5656_v22 }
 0x31d   :  { %v5289_v27 = vpop.eup %5288  ;;  %5308 = vrsqrt.f32 %v5683_v42  ;;  %vm4077_vm12 = vcmp.eq.f32.partialorder %v5649_v16, inf  ;;  %vm4079_vm13 = vcmp.eq.f32.partialorder %v5649_v16, 0.0  ;;  %v4080_v4 = vand.u32 2147483648, %v5649_v16 }
 0x31e   :  { %v5291_v47 = vpop.eup %5290  ;;  %5310 = vrsqrt.f32 %v5686_v14  ;;  %v4062_v24 = vmul.f32 %v5289_v27, %v5647_v48  ;;  %vm4105_vm14 = vcmp.eq.f32.partialorder %v5659_v9, inf  ;;  %vm4107_vm15 = vcmp.eq.f32.partialorder %v5659_v9, 0.0 }
 0x31f   :  { %v5293_v51 = vpop.eup %5292  ;;  %v4076_v35 = vmul.f32 %v5291_v47, %v5649_v16  ;;  %v4108_v7 = vand.u32 2147483648, %v5659_v9  ;;  %v4129_v49 = vand.u32 2147483648, %v5683_v42 }
 0x320   :  { %v5295_v60 = vpop.eup %5294  ;;  %v4069_v63 = vmul.f32 %v5293_v51, %v5651_v52  ;;  %v4064_v1 = vsel %vm4063_vm4, %v5647_v48, %v4062_v24  ;;  %vm4126_vm4 = vcmp.eq.f32.partialorder %v5683_v42, inf }
 0x321   :  { %v5297_v2 = vpop.eup %5296  ;;  %v4083_v29 = vmul.f32 %v5295_v60, %v5654_v18  ;;  %v4078_v3 = vsel %vm4077_vm12, %v5649_v16, %v4076_v35  ;;  %v4067_v34 = vsel %vm4065_vm7, %v4066_v20, %v4064_v1  ;;  %vm4128_vm12 = vcmp.eq.f32.partialorder %v5683_v42, 0.0 }
 0x322   :  { %v5299_v6 = vpop.eup %5298  ;;  %v4090_v44 = vmul.f32 %v5297_v2, %v5656_v22  ;;  %v4071_v41 = vsel %vm4070_vm0, %v5651_v52, %v4069_v63  ;;  %v4081_v62 = vsel %vm4079_vm13, %v4080_v4, %v4078_v3  ;;  %vm4140_vm0 = vcmp.eq.f32.partialorder %v5686_v14, inf }
 0x323   :  { %v5301_v10 = vpop.eup %5300  ;;  %v4104_v55 = vmul.f32 %v5299_v6, %v5659_v9  ;;  %v4085_v48 = vsel %vm4084_vm1, %v5654_v18, %v4083_v29  ;;  %v4074_v16 = vsel %vm4072_vm2, %v4073_v56, %v4071_v41  ;;  %vm4142_vm1 = vcmp.eq.f32.partialorder %v5686_v14, 0.0 }
 0x324   :  { %v5303_v11 = vpop.eup %5302  ;;  %v4097_v12 = vmul.f32 %v5301_v10, %v5661_v23  ;;  %v4092_v45 = vsel %vm4091_vm10, %v5656_v22, %v4090_v44  ;;  %v4088_v19 = vsel %vm4086_vm8, %v4087_v43, %v4085_v48  ;;  %v4143_v18 = vand.u32 2147483648, %v5686_v14 }
 0x325   :  { %v5305_v13 = vpop.eup %5304  ;;  %v4111_v15 = vmul.f32 %v5303_v11, %v5664_v25  ;;  %v4095_v21 = vsel %vm4093_vm11, %v4094_v57, %v4092_v45  ;;  %v4106_v17 = vsel %vm4105_vm14, %v5659_v9, %v4104_v55  ;;  %vm4119_vm2 = vcmp.eq.f32.partialorder %v5678_v8, inf }
 0x326   :  { %v5307_v50 = vpop.eup %5306  ;;  %v4099_v59 = vsel %vm4098_vm3, %v5661_v23, %v4097_v12  ;;  %v4145_v53 = vpack.c.bf16 %v4095_v21, %v4067_v34  ;;  %v4109_v54 = vsel %vm4107_vm15, %v4108_v7, %v4106_v17  ;;  %v4118_v52 = vmul.f32 %v5305_v13, %v5678_v8 }
 0x327   :  { %v5309_v26 = vpop.eup %5308  ;;  %v4102_v22 = vsel %vm4100_vm5, %v4101_v40, %v4099_v59  ;;  %v4113_v0 = vsel %vm4112_vm6, %v5664_v25, %v4111_v15  ;;  %v4147_v28 = vpack.c.bf16 %v4109_v54, %v4081_v62  ;;  %v4132_v33 = vmul.f32 %v5307_v50, %v5681_v39 }
 0x328   :  { %v5311_v30 = vpop.eup %5310  ;;  %v4146_v38 = vpack.c.bf16 %v4102_v22, %v4074_v16  ;;  %v4116_v9 = vsel %vm4114_vm9, %v4115_v32, %v4113_v0  ;;  %v4125_v46 = vmul.f32 %v5309_v26, %v5683_v42  ;;  %v4120_v36 = vsel %vm4119_vm2, %v5678_v8, %v4118_v52 }
 0x329   :  { %v4148_v31 = vpack.c.bf16 %v4116_v9, %v4088_v19  ;;  %v4139_v23 = vmul.f32 %v5311_v30, %v5686_v14  ;;  %vm4133_vm3 = vcmp.eq.f32.partialorder %v5681_v39, inf  ;;  %v4122_v56 = vand.u32 2147483648, %v5678_v8 }
 0x32a   :  { %4441 = vmatprep.mubr.bf16.mxu0 %v4146_v38  ;;  %v4127_v5 = vsel %vm4126_vm4, %v5683_v42, %v4125_v46  ;;  %v4134_v40 = vsel %vm4133_vm3, %v5681_v39, %v4132_v33  ;;  %vm4121_vm5 = vcmp.eq.f32.partialorder %v5678_v8, 0.0  ;;  %v4136_v43 = vand.u32 2147483648, %v5681_v39 }
 0x32b   :  { %4489 = vmatprep.mubr.bf16.mxu1 %v4148_v31  ;;  %4442 = vmatmul.mubr.bf16.vlgmr.msra.gmra.mrb[16].mxu0 %v4145_v53  ;;  %v4130_v25 = vsel %vm4128_vm12, %v4129_v49, %v4127_v5  ;;  %v4141_v58 = vsel %vm4140_vm0, %v5686_v14, %v4139_v23  ;;  %v4123_v42 = vsel %vm4121_vm5, %v4122_v56, %v4120_v36  ;;  %vm4135_vm6 = vcmp.eq.f32.partialorder %v5681_v39, 0.0 }
 0x32c   :  { %4490 = vmatmul.mubr.bf16.vlgmr.msra.gmra.mrb[16].mxu1 %v4147_v28  ;;  %v4150_v37 = vpack.c.bf16 %v4130_v25, %v4130_v25  ;;  %v4144_v61 = vsel %vm4142_vm1, %v4143_v18, %v4141_v58  ;;  %v4137_v14 = vsel %vm4135_vm6, %v4136_v43, %v4134_v40  ;;  %v4149_v32 = vpack.c.bf16 %v4123_v42, %v4123_v42 }
 0x32d   :  { %v4152_v27 = vpack.c.bf16 %v4144_v61, %v4144_v61  ;;  %v4151_v47 = vpack.c.bf16 %v4137_v14, %v4137_v14 }
 0x32e   :  { %4449 = vmatprep.mubr.bf16.mxu0 %v4150_v37 }
 0x32f   :  { %4497 = vmatprep.mubr.bf16.mxu1 %v4152_v27 }
 0x333   :  { %4450 = vmatmul.mubr.bf16.gmra.mrb[20].mxu0 %v4149_v32 }
 0x334   :  { %4498 = vmatmul.mubr.bf16.gmra.mrb[20].mxu1 %v4151_v47 }
 0x3fe   :  { %v5102_v24 = vpop.f32.mrb[16].mxu0 }
 0x3ff   :  { %v5130_v20 = vpop.f32.mrb[16].mxu1  ;;  %v5103_v51 = vpop.f32.mrb[17].mxu0 }
 0x400   :  { %v5104_v57 = vadd.f32 %v5103_v51, %v5102_v24  ;;  %v5131_v35 = vpop.f32.mrb[17].mxu1  ;;  %v5105_v60 = vpop.f32.mrb[18].mxu0 }
 0x401   :  { %v5132_v63 = vadd.f32 %v5131_v35, %v5130_v20  ;;  %v5133_v8 = vpop.f32.mrb[18].mxu1  ;;  %v5106_v1 = vpop.f32.mrb[19].mxu0 }
 0x402   :  { %v5107_v2 = vadd.f32 %v5106_v1, %v5105_v60  ;;  %v5134_v29 = vpop.f32.mrb[19].mxu1 }
 0x403   :  { %v4492_v3 = vadd.f32 %v5132_v63, %v5104_v57  ;;  %v5135_v4 = vadd.f32 %v5134_v29, %v5133_v8 }
 0x405   :  { %4505 = vst [vmem:[#allocation8] sm:$0xff] %v4492_v3  ;;  %v4495_v39 = vadd.f32 %v5135_v4, %v5107_v2 }
 0x406   :  { %v5108_v6 = vpop.f32.mrb[20].mxu0 }
 0x407   :  { %4506 = vst [vmem:[#allocation8 + $0x8] sm:$0xff] %v4495_v39  ;;  %v5136_v44 = vpop.f32.mrb[20].mxu1  ;;  %v5109_v7 = vpop.f32.mrb[21].mxu0 }
 0x408   :  { %v5110_v10 = vadd.f32 %v5109_v7, %v5108_v6  ;;  %v5137_v41 = vpop.f32.mrb[21].mxu1  ;;  %v5111_v34 = vpop.f32.mrb[22].mxu0 }
 0x409   :  { %v5138_v55 = vadd.f32 %v5137_v41, %v5136_v44  ;;  %v5139_v11 = vpop.f32.mrb[22].mxu1  ;;  %v5112_v12 = vpop.f32.mrb[23].mxu0 }
 0x40a   :  { %v5140_v45 = vpop.f32.mrb[23].mxu1 }
 0x40b   :  { %v4500_v62 = vadd.f32 %v5138_v55, %v5110_v10 }
 0x40d   :  { %4507 = vst [vmem:[#allocation8 + $0x10] sm:$0xff] %v4500_v62 }
 0x40e   :  { %5389 = shalt.err (!%p5386_p0)
}
 0x40f   :  { %s5390_s27 = scalar_lea.hbm %s5800_s3, 384 }
 0x410   :  { %p5391_p1 = scmp.ne.s32.totalorder %s5800_s3, %s5390_s27  ;;  %p5394_p2 = scmp.lt.u32.totalorder %s5390_s27, %s5800_s3 }
 0x412   :  { %p5396_p3 = pnand %p5394_p2, %p5391_p1 }
 0x414   :  { %5399 = shalt.err (!%p5396_p3)
}
 0x415   :  { %s5414_s5 = smov 128   ;;  %s5415_s6 = smov 8  }
 0x416   :  { %4519 = dma.vmem_to_hbm [thread:$0]  %s4514_s23, 384, %s5800_s3, [#allocation4], %s5414_s5, %s5414_s5, %s5415_s6  }
 0x417   :  { %5404 = dma.done.wait [#allocation4], 384  }
 0x418   :  { %5405 = vsyncadd [#allocation4], 4294966912 }
 0x419   :  { %4523 = vsyncpa [#allocation3], 1 }
 0x41a   :  { %4524 = vsyncpa [#allocation6], 1 }
 0x41b   :  { %4525 = vsyncpa [#allocation4], 1 }

</bundles_post_ra>
